<compile_context>
chip_gen: v7x
topology: tpu7x:2x2x1
jax: 0.10.0
libtpu: 0.0.40
codegen_flags: <defaults>
</compile_context>

<pallas_src>
import jax
import jax.numpy as jnp
from jax import lax
from jax.experimental import pallas as pl
from jax.experimental.pallas import tpu as pltpu

# ----------------------------- module config -------------------------------
CONTEXT_LENGTH = 8
PREDICTION_LENGTH = 4
INPUT_SIZE = 1
NUM_FEAT_DYNAMIC_REAL = 1
NUM_FEAT_STATIC_REAL = 1
NUM_FEAT_STATIC_CAT = 1
CARDINALITY = [5]
EMBEDDING_DIM = [min(50, (c + 1) // 2) for c in CARDINALITY]          # [3]
LAGS_SEQ = [l - 1 for l in [1, 2, 4]]                                 # [0, 1, 3]
HIDDEN_SIZE = 32
NUM_LAYERS = 2
PAST_LENGTH = CONTEXT_LENGTH + max(LAGS_SEQ)                          # 11
DEFAULT_SCALE = 0.0
MINIMUM_SCALE = 0.01
NUM_FEATURES = (sum(EMBEDDING_DIM) + NUM_FEAT_DYNAMIC_REAL
                + NUM_FEAT_STATIC_REAL + 2 * INPUT_SIZE)              # 7
RNN_INPUT_SIZE = INPUT_SIZE * len(LAGS_SEQ) + NUM_FEATURES            # 10

B_PAD = 8   # sublane tile: pad batch to a full 8-row vreg

_VMEM = pl.BlockSpec(memory_space=pltpu.MemorySpace.VMEM)


# ---------------------- mean scaler (plain JAX / XLA) -----------------------
# (Not a standalone pallas_call: it touches <1 vreg of data; XLA fuses it into
#  the surrounding feature-prep glue.)
def mean_scaler(context, observed):
    context = context.astype(jnp.float32)
    observed = observed.astype(jnp.float32)
    weighted_sum = jnp.sum(jnp.abs(context) * observed, axis=1, keepdims=True)
    total_weight = jnp.sum(observed, axis=1, keepdims=True)
    scale = weighted_sum / jnp.maximum(total_weight, 1.0)
    scale = jnp.where(total_weight > 0.0, scale, DEFAULT_SCALE)
    scale = jnp.maximum(scale, MINIMUM_SCALE)
    loc = jnp.zeros_like(scale)                          # MeanScaler => loc = 0
    return context / scale, loc, scale


# ---------------------- fused 2-layer LSTM (Pallas) --------------------------
def _fused_lstm_kernel(x_ref, wih0_ref, whh0_ref, b0_ref,
                       wih1_ref, whh1_ref, b1_ref,
                       y_ref, hn_ref, cn_ref,
                       gx_ref, y0_ref):
    """Runs both LSTM layers over the whole sequence inside one kernel.

    x_ref : (T*Bp, I)      flattened time-major input (batch padded to Bp=8)
    y_ref : (T*Bp, H)      final-layer hidden states
    hn/cn : (L, Bp, H)     final states of each layer
    gx_ref: (T*Bp, 4H)     scratch for hoisted input projection (reused per layer)
    y0_ref: (T*Bp, H)      scratch holding layer-0 output sequence
    """
    _, Bp, H = hn_ref.shape
    TB = gx_ref.shape[0]
    T = TB // Bp

    # lane-index mask selecting the g-gate block [2H, 3H) of the 4H=128 lanes
    lane = lax.broadcasted_iota(jnp.int32, (Bp, 4 * H), 1)
    is_g = (lane >= 2 * H) & (lane < 3 * H)

    def run_layer(in_ref, wih_ref, whh_ref, b_ref, out_ref, layer_idx):
        # Hoisted input projection + bias: single MXU matmul, M = T*Bp.
        gx_ref[...] = (jnp.dot(in_ref[...], wih_ref[...],
                               preferred_element_type=jnp.float32)
                       + b_ref[...])
        w_hh = whh_ref[...]          # load once per layer, keep in vregs

        def step(t, carry):
            h, c = carry
            off = pl.multiple_of(t * Bp, Bp)
            gates = (gx_ref[pl.ds(off, Bp), :]
                     + jnp.dot(h, w_hh,
                               preferred_element_type=jnp.float32))   # (Bp,4H)
            # One full-vreg tanh (EUP); sigmoid(x) = 0.5*(1 + tanh(x/2)).
            pre = jnp.where(is_g, gates, 0.5 * gates)
            th = jnp.tanh(pre)
            act = jnp.where(is_g, th, 0.5 * th + 0.5)
            i_g = act[:, 0 * H:1 * H]
            f_g = act[:, 1 * H:2 * H]
            g_g = act[:, 2 * H:3 * H]
            o_g = act[:, 3 * H:4 * H]
            c_new = f_g * c + i_g * g_g
            h_new = o_g * jnp.tanh(c_new)
            out_ref[pl.ds(off, Bp), :] = h_new
            return (h_new, c_new)

        h0 = jnp.zeros((Bp, H), jnp.float32)
        c0 = jnp.zeros((Bp, H), jnp.float32)
        h_fin, c_fin = lax.fori_loop(0, T, step, (h0, c0), unroll=True)
        hn_ref[layer_idx] = h_fin
        cn_ref[layer_idx] = c_fin

    run_layer(x_ref, wih0_ref, whh0_ref, b0_ref, y0_ref, 0)
    run_layer(y0_ref, wih1_ref, whh1_ref, b1_ref, y_ref, 1)


def fused_lstm(x_tbi, w_ih, w_hh, bias):
    """x_tbi: (T, B, I) time-major.  Returns (y (T,B,H), h_n (L,B,H), c_n (L,B,H))."""
    T, B, I = x_tbi.shape
    H = HIDDEN_SIZE
    # Pad the batch (sublane) dimension to a full 8-row tile, flatten time x batch.
    x_pad = jnp.zeros((T, B_PAD, I), jnp.float32).at[:, :B, :].set(
        x_tbi.astype(jnp.float32))
    x_flat = x_pad.reshape(T * B_PAD, I)

    out_shape = (jax.ShapeDtypeStruct((T * B_PAD, H), jnp.float32),
                 jax.ShapeDtypeStruct((NUM_LAYERS, B_PAD, H), jnp.float32),
                 jax.ShapeDtypeStruct((NUM_LAYERS, B_PAD, H), jnp.float32))
    y_flat, h_n, c_n = pl.pallas_call(
        _fused_lstm_kernel,
        out_shape=out_shape,
        in_specs=[_VMEM] * 7,
        out_specs=(_VMEM, _VMEM, _VMEM),
        scratch_shapes=[pltpu.VMEM((T * B_PAD, 4 * H), jnp.float32),   # gx
                        pltpu.VMEM((T * B_PAD, H), jnp.float32)],      # layer-0 out
    )(x_flat, w_ih[0], w_hh[0], bias[0], w_ih[1], w_hh[1], bias[1])

    y = y_flat.reshape(T, B_PAD, H)[:, :B, :]
    return y, h_n[:, :B, :], c_n[:, :B, :]


# ------------------------------ glue (plain JAX) ----------------------------
def feature_embedder(feat_static_cat, emb_tables):
    outs = [jnp.take(tbl, feat_static_cat[:, i], axis=0)
            for i, tbl in enumerate(emb_tables)]
    return jnp.concatenate(outs, axis=-1)


def lagged_sequence_values(indices, prior_seq, seq):
    # input_size == 1: sequences are (B, T'); result (B, T, num_lags)
    full = jnp.concatenate([prior_seq, seq], axis=1)
    T = seq.shape[1]
    vals = []
    for lag in indices:
        begin = full.shape[1] - lag - T
        vals.append(full[:, begin:begin + T])
    return jnp.stack(vals, axis=-1)


def unroll_lagged_rnn(params, feat_static_cat, feat_static_real, past_time_feat,
                      past_target, past_observed_values, future_time_feat):
    context = past_target[:, -CONTEXT_LENGTH:]
    observed_context = past_observed_values[:, -CONTEXT_LENGTH:]
    scaled_input, loc, scale = mean_scaler(context, observed_context)

    # future_length == 1 on the forward() path -> no future-target extension.
    prior_input = (past_target[:, :-CONTEXT_LENGTH] - loc) / scale
    lags = lagged_sequence_values(LAGS_SEQ, prior_input, scaled_input)   # (B,T,L)

    time_feat = jnp.concatenate(
        [past_time_feat[:, -CONTEXT_LENGTH + 1:], future_time_feat], axis=1)

    embedded_cat = feature_embedder(feat_static_cat, params["emb_tables"])
    log_abs_loc = jnp.log1p(jnp.abs(loc))        # input_size == 1
    log_scale = jnp.log(scale)
    static_feat = jnp.concatenate(
        [embedded_cat, feat_static_real, log_abs_loc, log_scale], axis=-1)

    T = time_feat.shape[1]
    expanded_static = jnp.broadcast_to(
        static_feat[:, None, :], (static_feat.shape[0], T, static_feat.shape[-1]))
    features = jnp.concatenate([expanded_static, time_feat], axis=-1)
    rnn_input = jnp.concatenate([lags, features], axis=-1)   # (B, T, RNN_INPUT_SIZE)

    # time-major for the fused kernel (both layers in ONE pallas_call)
    x = jnp.transpose(rnn_input, (1, 0, 2)).astype(jnp.float32)
    y_tbh, h_n, c_n = fused_lstm(x, params["w_ih"], params["w_hh"], params["bias"])
    output = jnp.transpose(y_tbh, (1, 0, 2))                 # (B, T, H)
    state = (h_n, c_n)                                       # (L, B, H) each
    return loc, scale, output, static_feat, state


@jax.jit
def forward(params, feat_static_cat, feat_static_real, past_time_feat,
            past_target, past_observed_values, future_time_feat):
    # forward() uses only the first future time step for unrolling.
    loc, scale, rnn_output, static_feat, state = unroll_lagged_rnn(
        params, feat_static_cat, feat_static_real, past_time_feat,
        past_target, past_observed_values, future_time_feat[:, :1])
    # TODO(synk): autoregressive sampling loop requires the abstract sample();
    # returning the unrolled-RNN outputs instead.
    return loc, scale, rnn_output, static_feat, state


# ------------------------------ params --------------------------------------
def init_params(key):
    n_keys = 1 + 4 * NUM_LAYERS
    keys = jax.random.split(key, n_keys)
    emb_tables = [0.1 * jax.random.normal(
        keys[0], (CARDINALITY[0], EMBEDDING_DIM[0]), jnp.float32)]
    bound = float(1.0 / (HIDDEN_SIZE ** 0.5))
    w_ih, w_hh, bias = [], [], []
    k = 1
    in_size = RNN_INPUT_SIZE
    for _ in range(NUM_LAYERS):
        w_ih.append(jax.random.uniform(keys[k], (in_size, 4 * HIDDEN_SIZE),
                                       jnp.float32, -bound, bound)); k += 1
        w_hh.append(jax.random.uniform(keys[k], (HIDDEN_SIZE, 4 * HIDDEN_SIZE),
                                       jnp.float32, -bound, bound)); k += 1
        b_ih = jax.random.uniform(keys[k], (4 * HIDDEN_SIZE,),
                                  jnp.float32, -bound, bound); k += 1
        b_hh = jax.random.uniform(keys[k], (4 * HIDDEN_SIZE,),
                                  jnp.float32, -bound, bound); k += 1
        bias.append((b_ih + b_hh)[None, :])
        in_size = HIDDEN_SIZE
    return {"emb_tables": emb_tables, "w_ih": w_ih, "w_hh": w_hh, "bias": bias}


# -------------------------- pure-JAX reference ------------------------------
def _ref_lstm_layer(x_tbi, w_ih, w_hh, bias):
    B = x_tbi.shape[1]
    H = w_hh.shape[0]
    h0 = jnp.zeros((B, H), jnp.float32)
    c0 = jnp.zeros((B, H), jnp.float32)

    def step(carry, x_t):
        h, c = carry
        gates = x_t @ w_ih + h @ w_hh + bias
        i_g = jax.nn.sigmoid(gates[:, 0 * H:1 * H])
        f_g = jax.nn.sigmoid(gates[:, 1 * H:2 * H])
        g_g = jnp.tanh(gates[:, 2 * H:3 * H])
        o_g = jax.nn.sigmoid(gates[:, 3 * H:4 * H])
        c_new = f_g * c + i_g * g_g
        h_new = o_g * jnp.tanh(c_new)
        return (h_new, c_new), h_new

    (_, _), ys = lax.scan(step, (h0, c0), x_tbi)
    return ys


# --------------------------------- main --------------------------------------
if __name__ == "__main__":
    key = jax.random.PRNGKey(0)
    k_p, k1, k2, k3, k4, k5, k6 = jax.random.split(key, 7)
    B = 2
    params = init_params(k_p)

    feat_static_cat = jax.random.randint(
        k1, (B, NUM_FEAT_STATIC_CAT), 0, CARDINALITY[0], dtype=jnp.int32)
    feat_static_real = jax.random.normal(
        k2, (B, NUM_FEAT_STATIC_REAL), jnp.float32)
    past_time_feat = jax.random.normal(
        k3, (B, PAST_LENGTH, NUM_FEAT_DYNAMIC_REAL), jnp.float32)
    past_target = jax.random.normal(k4, (B, PAST_LENGTH), jnp.float32)
    past_observed_values = (jax.random.uniform(k5, (B, PAST_LENGTH)) > 0.1
                            ).astype(jnp.float32)
    future_time_feat = jax.random.normal(
        k6, (B, PREDICTION_LENGTH, NUM_FEAT_DYNAMIC_REAL), jnp.float32)

    loc, scale, rnn_output, static_feat, (h_n, c_n) = forward(
        params, feat_static_cat, feat_static_real, past_time_feat,
        past_target, past_observed_values, future_time_feat)
    jax.block_until_ready((loc, scale, rnn_output, static_feat, h_n, c_n))

    # shape checks (match PyTorch module conventions)
    assert loc.shape == (B, 1) and scale.shape == (B, 1)
    assert rnn_output.shape == (B, CONTEXT_LENGTH, HIDDEN_SIZE)
    assert static_feat.shape == (B, NUM_FEATURES - NUM_FEAT_DYNAMIC_REAL)
    assert h_n.shape == (NUM_LAYERS, B, HIDDEN_SIZE)
    assert c_n.shape == (NUM_LAYERS, B, HIDDEN_SIZE)

    # numerical check of the fused Pallas LSTM against a pure-JAX scan reference
    # (rebuild the same rnn_input in plain JAX)
    context = past_target[:, -CONTEXT_LENGTH:]
    obs_ctx = past_observed_values[:, -CONTEXT_LENGTH:]
    wsum = jnp.sum(jnp.abs(context) * obs_ctx, axis=1, keepdims=True)
    twgt = jnp.sum(obs_ctx, axis=1, keepdims=True)
    ref_scale = jnp.maximum(
        jnp.where(twgt > 0, wsum / jnp.maximum(twgt, 1.0), DEFAULT_SCALE),
        MINIMUM_SCALE)
    ref_loc = jnp.zeros_like(ref_scale)
    scaled = context / ref_scale
    prior = (past_target[:, :-CONTEXT_LENGTH] - ref_loc) / ref_scale
    lags = lagged_sequence_values(LAGS_SEQ, prior, scaled)
    tfeat = jnp.concatenate(
        [past_time_feat[:, -CONTEXT_LENGTH + 1:], future_time_feat[:, :1]], axis=1)
    emb = feature_embedder(feat_static_cat, params["emb_tables"])
    sfeat = jnp.concatenate(
        [emb, feat_static_real, jnp.log1p(jnp.abs(ref_loc)), jnp.log(ref_scale)],
        axis=-1)
    exp_s = jnp.broadcast_to(sfeat[:, None, :], (B, tfeat.shape[1], sfeat.shape[-1]))
    ref_in = jnp.concatenate([lags, exp_s, tfeat], axis=-1)
    x_ref = jnp.transpose(ref_in, (1, 0, 2))
    for l in range(NUM_LAYERS):
        x_ref = _ref_lstm_layer(x_ref, params["w_ih"][l], params["w_hh"][l],
                                params["bias"][l])
    ref_out = jnp.transpose(x_ref, (1, 0, 2))
    assert jnp.allclose(rnn_output, ref_out, atol=2e-3, rtol=2e-3), (
        float(jnp.max(jnp.abs(rnn_output - ref_out))))
    assert jnp.allclose(scale, ref_scale, atol=1e-5)

    print("KERNEL_OK")
</pallas_src>

<mosaic_0001>
module attributes {stable_mosaic.version = 11 : i64} {
  func.func @_fused_lstm_kernel(%arg0: memref<64x10xf32, #tpu.memory_space<vmem>>, %arg1: memref<10x128xf32, #tpu.memory_space<vmem>>, %arg2: memref<32x128xf32, #tpu.memory_space<vmem>>, %arg3: memref<1x128xf32, #tpu.memory_space<vmem>>, %arg4: memref<32x128xf32, #tpu.memory_space<vmem>>, %arg5: memref<32x128xf32, #tpu.memory_space<vmem>>, %arg6: memref<1x128xf32, #tpu.memory_space<vmem>>, %arg7: memref<64x32xf32, #tpu.memory_space<vmem>>, %arg8: memref<2x8x32xf32, #tpu.memory_space<vmem>>, %arg9: memref<2x8x32xf32, #tpu.memory_space<vmem>>, %arg10: memref<64x128xf32, #tpu.memory_space<vmem>>, %arg11: memref<64x32xf32, #tpu.memory_space<vmem>>) attributes {dimension_semantics = [], scalar_prefetch = 0 : i64, scratch_operands = 2 : i64, tpu.core_type = #tpu.core_type<tc>} {
    %0 = tpu.iota {dimensions = array<i32: 1>} : vector<8x128xi32>
    %c64_i32 = arith.constant 64 : i32
    %1 = vector.broadcast %c64_i32 : i32 to vector<8x128xi32>
    %2 = arith.cmpi sge, %0, %1 : vector<8x128xi32>
    %c96_i32 = arith.constant 96 : i32
    %3 = vector.broadcast %c96_i32 : i32 to vector<8x128xi32>
    %4 = arith.cmpi slt, %0, %3 : vector<8x128xi32>
    %5 = arith.andi %2, %4 : vector<8x128xi1>
    %c0 = arith.constant 0 : index
    %c0_0 = arith.constant 0 : index
    %6 = vector.load %arg0[%c0, %c0_0] : memref<64x10xf32, #tpu.memory_space<vmem>>, vector<64x10xf32>
    %c0_1 = arith.constant 0 : index
    %c0_2 = arith.constant 0 : index
    %7 = vector.load %arg1[%c0_1, %c0_2] : memref<10x128xf32, #tpu.memory_space<vmem>>, vector<10x128xf32>
    %cst = arith.constant dense<0.000000e+00> : vector<64x128xf32>
    %8 = tpu.matmul %6, %7, %cst {dimension_numbers = #tpu.dot_dimension_numbers<[1], [0], [0], [1], [0, 0, 1, 1], [], []>} : vector<64x10xf32>, vector<10x128xf32>, vector<64x128xf32> -> vector<64x128xf32>
    %c0_3 = arith.constant 0 : index
    %c0_4 = arith.constant 0 : index
    %9 = vector.load %arg3[%c0_3, %c0_4] : memref<1x128xf32, #tpu.memory_space<vmem>>, vector<1x128xf32>
    %10 = vector.broadcast %9 : vector<1x128xf32> to vector<64x128xf32>
    %11 = arith.addf %8, %10 : vector<64x128xf32>
    %c0_5 = arith.constant 0 : index
    %c0_6 = arith.constant 0 : index
    %12 = vector.load %arg10[%c0_5, %c0_6] : memref<64x128xf32, #tpu.memory_space<vmem>>, vector<64x128xf32>
    tpu.vector_store %arg10[%c0_5, %c0_6], %11 {strides = array<i32>} : memref<64x128xf32, #tpu.memory_space<vmem>>, vector<64x128xf32>,
    %c0_7 = arith.constant 0 : index
    %c0_8 = arith.constant 0 : index
    %13 = vector.load %arg2[%c0_7, %c0_8] : memref<32x128xf32, #tpu.memory_space<vmem>>, vector<32x128xf32>
    %cst_9 = arith.constant 0.000000e+00 : f32
    %14 = vector.broadcast %cst_9 : f32 to vector<8x32xf32>
    %cst_10 = arith.constant 0.000000e+00 : f32
    %15 = vector.broadcast %cst_10 : f32 to vector<8x32xf32>
    %c0_i32 = arith.constant 0 : i32
    %c8_i32 = arith.constant 8 : i32
    %16 = arith.muli %c0_i32, %c8_i32 : i32
    %17 = tpu.assume_multiple %16, 8 : i32
    %18 = arith.index_cast %17 : i32 to index
    %c0_11 = arith.constant 0 : index
    %19 = vector.load %arg10[%18, %c0_11] : memref<64x128xf32, #tpu.memory_space<vmem>>, vector<8x128xf32>
    %cst_12 = arith.constant dense<0.000000e+00> : vector<8x128xf32>
    %20 = tpu.matmul %14, %13, %cst_12 {dimension_numbers = #tpu.dot_dimension_numbers<[1], [0], [0], [1], [0, 0, 1, 1], [], []>} : vector<8x32xf32>, vector<32x128xf32>, vector<8x128xf32> -> vector<8x128xf32>
    %21 = arith.addf %19, %20 : vector<8x128xf32>
    %cst_13 = arith.constant 5.000000e-01 : f32
    %22 = vector.broadcast %cst_13 : f32 to vector<8x128xf32>
    %23 = arith.mulf %22, %21 : vector<8x128xf32>
    %24 = arith.select %5, %21, %23 : vector<8x128xi1>, vector<8x128xf32>
    %25 = math.tanh %24 : vector<8x128xf32>
    %cst_14 = arith.constant 5.000000e-01 : f32
    %26 = vector.broadcast %cst_14 : f32 to vector<8x128xf32>
    %27 = arith.mulf %26, %25 : vector<8x128xf32>
    %cst_15 = arith.constant 5.000000e-01 : f32
    %28 = vector.broadcast %cst_15 : f32 to vector<8x128xf32>
    %29 = arith.addf %27, %28 : vector<8x128xf32>
    %30 = arith.select %5, %25, %29 : vector<8x128xi1>, vector<8x128xf32>
    %31 = vector.extract_strided_slice %30 {offsets = [0, 0], sizes = [8, 32], strides = [1, 1]} : vector<8x128xf32> to vector<8x32xf32>
    %32 = vector.extract_strided_slice %30 {offsets = [0, 32], sizes = [8, 32], strides = [1, 1]} : vector<8x128xf32> to vector<8x32xf32>
    %33 = vector.extract_strided_slice %30 {offsets = [0, 64], sizes = [8, 32], strides = [1, 1]} : vector<8x128xf32> to vector<8x32xf32>
    %34 = vector.extract_strided_slice %30 {offsets = [0, 96], sizes = [8, 32], strides = [1, 1]} : vector<8x128xf32> to vector<8x32xf32>
    %35 = arith.mulf %32, %15 : vector<8x32xf32>
    %36 = arith.mulf %31, %33 : vector<8x32xf32>
    %37 = arith.addf %35, %36 : vector<8x32xf32>
    %38 = math.tanh %37 : vector<8x32xf32>
    %39 = arith.mulf %34, %38 : vector<8x32xf32>
    %40 = arith.index_cast %17 : i32 to index
    %c0_16 = arith.constant 0 : index
    %41 = vector.load %arg11[%40, %c0_16] : memref<64x32xf32, #tpu.memory_space<vmem>>, vector<8x32xf32>
    tpu.vector_store %arg11[%40, %c0_16], %39 {strides = array<i32>} : memref<64x32xf32, #tpu.memory_space<vmem>>, vector<8x32xf32>,
    %c1_i32 = arith.constant 1 : i32
    %c8_i32_17 = arith.constant 8 : i32
    %42 = arith.muli %c1_i32, %c8_i32_17 : i32
    %43 = tpu.assume_multiple %42, 8 : i32
    %44 = arith.index_cast %43 : i32 to index
    %c0_18 = arith.constant 0 : index
    %45 = vector.load %arg10[%44, %c0_18] : memref<64x128xf32, #tpu.memory_space<vmem>>, vector<8x128xf32>
    %cst_19 = arith.constant dense<0.000000e+00> : vector<8x128xf32>
    %46 = tpu.matmul %39, %13, %cst_19 {dimension_numbers = #tpu.dot_dimension_numbers<[1], [0], [0], [1], [0, 0, 1, 1], [], []>} : vector<8x32xf32>, vector<32x128xf32>, vector<8x128xf32> -> vector<8x128xf32>
    %47 = arith.addf %45, %46 : vector<8x128xf32>
    %cst_20 = arith.constant 5.000000e-01 : f32
    %48 = vector.broadcast %cst_20 : f32 to vector<8x128xf32>
    %49 = arith.mulf %48, %47 : vector<8x128xf32>
    %50 = arith.select %5, %47, %49 : vector<8x128xi1>, vector<8x128xf32>
    %51 = math.tanh %50 : vector<8x128xf32>
    %cst_21 = arith.constant 5.000000e-01 : f32
    %52 = vector.broadcast %cst_21 : f32 to vector<8x128xf32>
    %53 = arith.mulf %52, %51 : vector<8x128xf32>
    %cst_22 = arith.constant 5.000000e-01 : f32
    %54 = vector.broadcast %cst_22 : f32 to vector<8x128xf32>
    %55 = arith.addf %53, %54 : vector<8x128xf32>
    %56 = arith.select %5, %51, %55 : vector<8x128xi1>, vector<8x128xf32>
    %57 = vector.extract_strided_slice %56 {offsets = [0, 0], sizes = [8, 32], strides = [1, 1]} : vector<8x128xf32> to vector<8x32xf32>
    %58 = vector.extract_strided_slice %56 {offsets = [0, 32], sizes = [8, 32], strides = [1, 1]} : vector<8x128xf32> to vector<8x32xf32>
    %59 = vector.extract_strided_slice %56 {offsets = [0, 64], sizes = [8, 32], strides = [1, 1]} : vector<8x128xf32> to vector<8x32xf32>
    %60 = vector.extract_strided_slice %56 {offsets = [0, 96], sizes = [8, 32], strides = [1, 1]} : vector<8x128xf32> to vector<8x32xf32>
    %61 = arith.mulf %58, %37 : vector<8x32xf32>
    %62 = arith.mulf %57, %59 : vector<8x32xf32>
    %63 = arith.addf %61, %62 : vector<8x32xf32>
    %64 = math.tanh %63 : vector<8x32xf32>
    %65 = arith.mulf %60, %64 : vector<8x32xf32>
    %66 = arith.index_cast %43 : i32 to index
    %c0_23 = arith.constant 0 : index
    %67 = vector.load %arg11[%66, %c0_23] : memref<64x32xf32, #tpu.memory_space<vmem>>, vector<8x32xf32>
    tpu.vector_store %arg11[%66, %c0_23], %65 {strides = array<i32>} : memref<64x32xf32, #tpu.memory_space<vmem>>, vector<8x32xf32>,
    %c2_i32 = arith.constant 2 : i32
    %c8_i32_24 = arith.constant 8 : i32
    %68 = arith.muli %c2_i32, %c8_i32_24 : i32
    %69 = tpu.assume_multiple %68, 8 : i32
    %70 = arith.index_cast %69 : i32 to index
    %c0_25 = arith.constant 0 : index
    %71 = vector.load %arg10[%70, %c0_25] : memref<64x128xf32, #tpu.memory_space<vmem>>, vector<8x128xf32>
    %cst_26 = arith.constant dense<0.000000e+00> : vector<8x128xf32>
    %72 = tpu.matmul %65, %13, %cst_26 {dimension_numbers = #tpu.dot_dimension_numbers<[1], [0], [0], [1], [0, 0, 1, 1], [], []>} : vector<8x32xf32>, vector<32x128xf32>, vector<8x128xf32> -> vector<8x128xf32>
    %73 = arith.addf %71, %72 : vector<8x128xf32>
    %cst_27 = arith.constant 5.000000e-01 : f32
    %74 = vector.broadcast %cst_27 : f32 to vector<8x128xf32>
    %75 = arith.mulf %74, %73 : vector<8x128xf32>
    %76 = arith.select %5, %73, %75 : vector<8x128xi1>, vector<8x128xf32>
    %77 = math.tanh %76 : vector<8x128xf32>
    %cst_28 = arith.constant 5.000000e-01 : f32
    %78 = vector.broadcast %cst_28 : f32 to vector<8x128xf32>
    %79 = arith.mulf %78, %77 : vector<8x128xf32>
    %cst_29 = arith.constant 5.000000e-01 : f32
    %80 = vector.broadcast %cst_29 : f32 to vector<8x128xf32>
    %81 = arith.addf %79, %80 : vector<8x128xf32>
    %82 = arith.select %5, %77, %81 : vector<8x128xi1>, vector<8x128xf32>
    %83 = vector.extract_strided_slice %82 {offsets = [0, 0], sizes = [8, 32], strides = [1, 1]} : vector<8x128xf32> to vector<8x32xf32>
    %84 = vector.extract_strided_slice %82 {offsets = [0, 32], sizes = [8, 32], strides = [1, 1]} : vector<8x128xf32> to vector<8x32xf32>
    %85 = vector.extract_strided_slice %82 {offsets = [0, 64], sizes = [8, 32], strides = [1, 1]} : vector<8x128xf32> to vector<8x32xf32>
    %86 = vector.extract_strided_slice %82 {offsets = [0, 96], sizes = [8, 32], strides = [1, 1]} : vector<8x128xf32> to vector<8x32xf32>
    %87 = arith.mulf %84, %63 : vector<8x32xf32>
    %88 = arith.mulf %83, %85 : vector<8x32xf32>
    %89 = arith.addf %87, %88 : vector<8x32xf32>
    %90 = math.tanh %89 : vector<8x32xf32>
    %91 = arith.mulf %86, %90 : vector<8x32xf32>
    %92 = arith.index_cast %69 : i32 to index
    %c0_30 = arith.constant 0 : index
    %93 = vector.load %arg11[%92, %c0_30] : memref<64x32xf32, #tpu.memory_space<vmem>>, vector<8x32xf32>
    tpu.vector_store %arg11[%92, %c0_30], %91 {strides = array<i32>} : memref<64x32xf32, #tpu.memory_space<vmem>>, vector<8x32xf32>,
    %c3_i32 = arith.constant 3 : i32
    %c8_i32_31 = arith.constant 8 : i32
    %94 = arith.muli %c3_i32, %c8_i32_31 : i32
    %95 = tpu.assume_multiple %94, 8 : i32
    %96 = arith.index_cast %95 : i32 to index
    %c0_32 = arith.constant 0 : index
    %97 = vector.load %arg10[%96, %c0_32] : memref<64x128xf32, #tpu.memory_space<vmem>>, vector<8x128xf32>
    %cst_33 = arith.constant dense<0.000000e+00> : vector<8x128xf32>
    %98 = tpu.matmul %91, %13, %cst_33 {dimension_numbers = #tpu.dot_dimension_numbers<[1], [0], [0], [1], [0, 0, 1, 1], [], []>} : vector<8x32xf32>, vector<32x128xf32>, vector<8x128xf32> -> vector<8x128xf32>
    %99 = arith.addf %97, %98 : vector<8x128xf32>
    %cst_34 = arith.constant 5.000000e-01 : f32
    %100 = vector.broadcast %cst_34 : f32 to vector<8x128xf32>
    %101 = arith.mulf %100, %99 : vector<8x128xf32>
    %102 = arith.select %5, %99, %101 : vector<8x128xi1>, vector<8x128xf32>
    %103 = math.tanh %102 : vector<8x128xf32>
    %cst_35 = arith.constant 5.000000e-01 : f32
    %104 = vector.broadcast %cst_35 : f32 to vector<8x128xf32>
    %105 = arith.mulf %104, %103 : vector<8x128xf32>
    %cst_36 = arith.constant 5.000000e-01 : f32
    %106 = vector.broadcast %cst_36 : f32 to vector<8x128xf32>
    %107 = arith.addf %105, %106 : vector<8x128xf32>
    %108 = arith.select %5, %103, %107 : vector<8x128xi1>, vector<8x128xf32>
    %109 = vector.extract_strided_slice %108 {offsets = [0, 0], sizes = [8, 32], strides = [1, 1]} : vector<8x128xf32> to vector<8x32xf32>
    %110 = vector.extract_strided_slice %108 {offsets = [0, 32], sizes = [8, 32], strides = [1, 1]} : vector<8x128xf32> to vector<8x32xf32>
    %111 = vector.extract_strided_slice %108 {offsets = [0, 64], sizes = [8, 32], strides = [1, 1]} : vector<8x128xf32> to vector<8x32xf32>
    %112 = vector.extract_strided_slice %108 {offsets = [0, 96], sizes = [8, 32], strides = [1, 1]} : vector<8x128xf32> to vector<8x32xf32>
    %113 = arith.mulf %110, %89 : vector<8x32xf32>
    %114 = arith.mulf %109, %111 : vector<8x32xf32>
    %115 = arith.addf %113, %114 : vector<8x32xf32>
    %116 = math.tanh %115 : vector<8x32xf32>
    %117 = arith.mulf %112, %116 : vector<8x32xf32>
    %118 = arith.index_cast %95 : i32 to index
    %c0_37 = arith.constant 0 : index
    %119 = vector.load %arg11[%118, %c0_37] : memref<64x32xf32, #tpu.memory_space<vmem>>, vector<8x32xf32>
    tpu.vector_store %arg11[%118, %c0_37], %117 {strides = array<i32>} : memref<64x32xf32, #tpu.memory_space<vmem>>, vector<8x32xf32>,
    %c4_i32 = arith.constant 4 : i32
    %c8_i32_38 = arith.constant 8 : i32
    %120 = arith.muli %c4_i32, %c8_i32_38 : i32
    %121 = tpu.assume_multiple %120, 8 : i32
    %122 = arith.index_cast %121 : i32 to index
    %c0_39 = arith.constant 0 : index
    %123 = vector.load %arg10[%122, %c0_39] : memref<64x128xf32, #tpu.memory_space<vmem>>, vector<8x128xf32>
    %cst_40 = arith.constant dense<0.000000e+00> : vector<8x128xf32>
    %124 = tpu.matmul %117, %13, %cst_40 {dimension_numbers = #tpu.dot_dimension_numbers<[1], [0], [0], [1], [0, 0, 1, 1], [], []>} : vector<8x32xf32>, vector<32x128xf32>, vector<8x128xf32> -> vector<8x128xf32>
    %125 = arith.addf %123, %124 : vector<8x128xf32>
    %cst_41 = arith.constant 5.000000e-01 : f32
    %126 = vector.broadcast %cst_41 : f32 to vector<8x128xf32>
    %127 = arith.mulf %126, %125 : vector<8x128xf32>
    %128 = arith.select %5, %125, %127 : vector<8x128xi1>, vector<8x128xf32>
    %129 = math.tanh %128 : vector<8x128xf32>
    %cst_42 = arith.constant 5.000000e-01 : f32
    %130 = vector.broadcast %cst_42 : f32 to vector<8x128xf32>
    %131 = arith.mulf %130, %129 : vector<8x128xf32>
    %cst_43 = arith.constant 5.000000e-01 : f32
    %132 = vector.broadcast %cst_43 : f32 to vector<8x128xf32>
    %133 = arith.addf %131, %132 : vector<8x128xf32>
    %134 = arith.select %5, %129, %133 : vector<8x128xi1>, vector<8x128xf32>
    %135 = vector.extract_strided_slice %134 {offsets = [0, 0], sizes = [8, 32], strides = [1, 1]} : vector<8x128xf32> to vector<8x32xf32>
    %136 = vector.extract_strided_slice %134 {offsets = [0, 32], sizes = [8, 32], strides = [1, 1]} : vector<8x128xf32> to vector<8x32xf32>
    %137 = vector.extract_strided_slice %134 {offsets = [0, 64], sizes = [8, 32], strides = [1, 1]} : vector<8x128xf32> to vector<8x32xf32>
    %138 = vector.extract_strided_slice %134 {offsets = [0, 96], sizes = [8, 32], strides = [1, 1]} : vector<8x128xf32> to vector<8x32xf32>
    %139 = arith.mulf %136, %115 : vector<8x32xf32>
    %140 = arith.mulf %135, %137 : vector<8x32xf32>
    %141 = arith.addf %139, %140 : vector<8x32xf32>
    %142 = math.tanh %141 : vector<8x32xf32>
    %143 = arith.mulf %138, %142 : vector<8x32xf32>
    %144 = arith.index_cast %121 : i32 to index
    %c0_44 = arith.constant 0 : index
    %145 = vector.load %arg11[%144, %c0_44] : memref<64x32xf32, #tpu.memory_space<vmem>>, vector<8x32xf32>
    tpu.vector_store %arg11[%144, %c0_44], %143 {strides = array<i32>} : memref<64x32xf32, #tpu.memory_space<vmem>>, vector<8x32xf32>,
    %c5_i32 = arith.constant 5 : i32
    %c8_i32_45 = arith.constant 8 : i32
    %146 = arith.muli %c5_i32, %c8_i32_45 : i32
    %147 = tpu.assume_multiple %146, 8 : i32
    %148 = arith.index_cast %147 : i32 to index
    %c0_46 = arith.constant 0 : index
    %149 = vector.load %arg10[%148, %c0_46] : memref<64x128xf32, #tpu.memory_space<vmem>>, vector<8x128xf32>
    %cst_47 = arith.constant dense<0.000000e+00> : vector<8x128xf32>
    %150 = tpu.matmul %143, %13, %cst_47 {dimension_numbers = #tpu.dot_dimension_numbers<[1], [0], [0], [1], [0, 0, 1, 1], [], []>} : vector<8x32xf32>, vector<32x128xf32>, vector<8x128xf32> -> vector<8x128xf32>
    %151 = arith.addf %149, %150 : vector<8x128xf32>
    %cst_48 = arith.constant 5.000000e-01 : f32
    %152 = vector.broadcast %cst_48 : f32 to vector<8x128xf32>
    %153 = arith.mulf %152, %151 : vector<8x128xf32>
    %154 = arith.select %5, %151, %153 : vector<8x128xi1>, vector<8x128xf32>
    %155 = math.tanh %154 : vector<8x128xf32>
    %cst_49 = arith.constant 5.000000e-01 : f32
    %156 = vector.broadcast %cst_49 : f32 to vector<8x128xf32>
    %157 = arith.mulf %156, %155 : vector<8x128xf32>
    %cst_50 = arith.constant 5.000000e-01 : f32
    %158 = vector.broadcast %cst_50 : f32 to vector<8x128xf32>
    %159 = arith.addf %157, %158 : vector<8x128xf32>
    %160 = arith.select %5, %155, %159 : vector<8x128xi1>, vector<8x128xf32>
    %161 = vector.extract_strided_slice %160 {offsets = [0, 0], sizes = [8, 32], strides = [1, 1]} : vector<8x128xf32> to vector<8x32xf32>
    %162 = vector.extract_strided_slice %160 {offsets = [0, 32], sizes = [8, 32], strides = [1, 1]} : vector<8x128xf32> to vector<8x32xf32>
    %163 = vector.extract_strided_slice %160 {offsets = [0, 64], sizes = [8, 32], strides = [1, 1]} : vector<8x128xf32> to vector<8x32xf32>
    %164 = vector.extract_strided_slice %160 {offsets = [0, 96], sizes = [8, 32], strides = [1, 1]} : vector<8x128xf32> to vector<8x32xf32>
    %165 = arith.mulf %162, %141 : vector<8x32xf32>
    %166 = arith.mulf %161, %163 : vector<8x32xf32>
    %167 = arith.addf %165, %166 : vector<8x32xf32>
    %168 = math.tanh %167 : vector<8x32xf32>
    %169 = arith.mulf %164, %168 : vector<8x32xf32>
    %170 = arith.index_cast %147 : i32 to index
    %c0_51 = arith.constant 0 : index
    %171 = vector.load %arg11[%170, %c0_51] : memref<64x32xf32, #tpu.memory_space<vmem>>, vector<8x32xf32>
    tpu.vector_store %arg11[%170, %c0_51], %169 {strides = array<i32>} : memref<64x32xf32, #tpu.memory_space<vmem>>, vector<8x32xf32>,
    %c6_i32 = arith.constant 6 : i32
    %c8_i32_52 = arith.constant 8 : i32
    %172 = arith.muli %c6_i32, %c8_i32_52 : i32
    %173 = tpu.assume_multiple %172, 8 : i32
    %174 = arith.index_cast %173 : i32 to index
    %c0_53 = arith.constant 0 : index
    %175 = vector.load %arg10[%174, %c0_53] : memref<64x128xf32, #tpu.memory_space<vmem>>, vector<8x128xf32>
    %cst_54 = arith.constant dense<0.000000e+00> : vector<8x128xf32>
    %176 = tpu.matmul %169, %13, %cst_54 {dimension_numbers = #tpu.dot_dimension_numbers<[1], [0], [0], [1], [0, 0, 1, 1], [], []>} : vector<8x32xf32>, vector<32x128xf32>, vector<8x128xf32> -> vector<8x128xf32>
    %177 = arith.addf %175, %176 : vector<8x128xf32>
    %cst_55 = arith.constant 5.000000e-01 : f32
    %178 = vector.broadcast %cst_55 : f32 to vector<8x128xf32>
    %179 = arith.mulf %178, %177 : vector<8x128xf32>
    %180 = arith.select %5, %177, %179 : vector<8x128xi1>, vector<8x128xf32>
    %181 = math.tanh %180 : vector<8x128xf32>
    %cst_56 = arith.constant 5.000000e-01 : f32
    %182 = vector.broadcast %cst_56 : f32 to vector<8x128xf32>
    %183 = arith.mulf %182, %181 : vector<8x128xf32>
    %cst_57 = arith.constant 5.000000e-01 : f32
    %184 = vector.broadcast %cst_57 : f32 to vector<8x128xf32>
    %185 = arith.addf %183, %184 : vector<8x128xf32>
    %186 = arith.select %5, %181, %185 : vector<8x128xi1>, vector<8x128xf32>
    %187 = vector.extract_strided_slice %186 {offsets = [0, 0], sizes = [8, 32], strides = [1, 1]} : vector<8x128xf32> to vector<8x32xf32>
    %188 = vector.extract_strided_slice %186 {offsets = [0, 32], sizes = [8, 32], strides = [1, 1]} : vector<8x128xf32> to vector<8x32xf32>
    %189 = vector.extract_strided_slice %186 {offsets = [0, 64], sizes = [8, 32], strides = [1, 1]} : vector<8x128xf32> to vector<8x32xf32>
    %190 = vector.extract_strided_slice %186 {offsets = [0, 96], sizes = [8, 32], strides = [1, 1]} : vector<8x128xf32> to vector<8x32xf32>
    %191 = arith.mulf %188, %167 : vector<8x32xf32>
    %192 = arith.mulf %187, %189 : vector<8x32xf32>
    %193 = arith.addf %191, %192 : vector<8x32xf32>
    %194 = math.tanh %193 : vector<8x32xf32>
    %195 = arith.mulf %190, %194 : vector<8x32xf32>
    %196 = arith.index_cast %173 : i32 to index
    %c0_58 = arith.constant 0 : index
    %197 = vector.load %arg11[%196, %c0_58] : memref<64x32xf32, #tpu.memory_space<vmem>>, vector<8x32xf32>
    tpu.vector_store %arg11[%196, %c0_58], %195 {strides = array<i32>} : memref<64x32xf32, #tpu.memory_space<vmem>>, vector<8x32xf32>,
    %c7_i32 = arith.constant 7 : i32
    %c8_i32_59 = arith.constant 8 : i32
    %198 = arith.muli %c7_i32, %c8_i32_59 : i32
    %199 = tpu.assume_multiple %198, 8 : i32
    %200 = arith.index_cast %199 : i32 to index
    %c0_60 = arith.constant 0 : index
    %201 = vector.load %arg10[%200, %c0_60] : memref<64x128xf32, #tpu.memory_space<vmem>>, vector<8x128xf32>
    %cst_61 = arith.constant dense<0.000000e+00> : vector<8x128xf32>
    %202 = tpu.matmul %195, %13, %cst_61 {dimension_numbers = #tpu.dot_dimension_numbers<[1], [0], [0], [1], [0, 0, 1, 1], [], []>} : vector<8x32xf32>, vector<32x128xf32>, vector<8x128xf32> -> vector<8x128xf32>
    %203 = arith.addf %201, %202 : vector<8x128xf32>
    %cst_62 = arith.constant 5.000000e-01 : f32
    %204 = vector.broadcast %cst_62 : f32 to vector<8x128xf32>
    %205 = arith.mulf %204, %203 : vector<8x128xf32>
    %206 = arith.select %5, %203, %205 : vector<8x128xi1>, vector<8x128xf32>
    %207 = math.tanh %206 : vector<8x128xf32>
    %cst_63 = arith.constant 5.000000e-01 : f32
    %208 = vector.broadcast %cst_63 : f32 to vector<8x128xf32>
    %209 = arith.mulf %208, %207 : vector<8x128xf32>
    %cst_64 = arith.constant 5.000000e-01 : f32
    %210 = vector.broadcast %cst_64 : f32 to vector<8x128xf32>
    %211 = arith.addf %209, %210 : vector<8x128xf32>
    %212 = arith.select %5, %207, %211 : vector<8x128xi1>, vector<8x128xf32>
    %213 = vector.extract_strided_slice %212 {offsets = [0, 0], sizes = [8, 32], strides = [1, 1]} : vector<8x128xf32> to vector<8x32xf32>
    %214 = vector.extract_strided_slice %212 {offsets = [0, 32], sizes = [8, 32], strides = [1, 1]} : vector<8x128xf32> to vector<8x32xf32>
    %215 = vector.extract_strided_slice %212 {offsets = [0, 64], sizes = [8, 32], strides = [1, 1]} : vector<8x128xf32> to vector<8x32xf32>
    %216 = vector.extract_strided_slice %212 {offsets = [0, 96], sizes = [8, 32], strides = [1, 1]} : vector<8x128xf32> to vector<8x32xf32>
    %217 = arith.mulf %214, %193 : vector<8x32xf32>
    %218 = arith.mulf %213, %215 : vector<8x32xf32>
    %219 = arith.addf %217, %218 : vector<8x32xf32>
    %220 = math.tanh %219 : vector<8x32xf32>
    %221 = arith.mulf %216, %220 : vector<8x32xf32>
    %222 = arith.index_cast %199 : i32 to index
    %c0_65 = arith.constant 0 : index
    %223 = vector.load %arg11[%222, %c0_65] : memref<64x32xf32, #tpu.memory_space<vmem>>, vector<8x32xf32>
    tpu.vector_store %arg11[%222, %c0_65], %221 {strides = array<i32>} : memref<64x32xf32, #tpu.memory_space<vmem>>, vector<8x32xf32>,
    %c8_i32_66 = arith.constant 8 : i32
    %c0_67 = arith.constant 0 : index
    %c0_68 = arith.constant 0 : index
    %c0_69 = arith.constant 0 : index
    %224 = vector.load %arg8[%c0_67, %c0_68, %c0_69] : memref<2x8x32xf32, #tpu.memory_space<vmem>>, vector<1x8x32xf32>
    %225 = vector.shape_cast %224 : vector<1x8x32xf32> to vector<8x32xf32>
    %226 = vector.shape_cast %221 : vector<8x32xf32> to vector<1x8x32xf32>
    tpu.vector_store %arg8[%c0_67, %c0_68, %c0_69], %226 {strides = array<i32>} : memref<2x8x32xf32, #tpu.memory_space<vmem>>, vector<1x8x32xf32>,
    %c0_70 = arith.constant 0 : index
    %c0_71 = arith.constant 0 : index
    %c0_72 = arith.constant 0 : index
    %227 = vector.load %arg9[%c0_70, %c0_71, %c0_72] : memref<2x8x32xf32, #tpu.memory_space<vmem>>, vector<1x8x32xf32>
    %228 = vector.shape_cast %227 : vector<1x8x32xf32> to vector<8x32xf32>
    %229 = vector.shape_cast %219 : vector<8x32xf32> to vector<1x8x32xf32>
    tpu.vector_store %arg9[%c0_70, %c0_71, %c0_72], %229 {strides = array<i32>} : memref<2x8x32xf32, #tpu.memory_space<vmem>>, vector<1x8x32xf32>,
    %c0_73 = arith.constant 0 : index
    %c0_74 = arith.constant 0 : index
    %230 = vector.load %arg11[%c0_73, %c0_74] : memref<64x32xf32, #tpu.memory_space<vmem>>, vector<64x32xf32>
    %c0_75 = arith.constant 0 : index
    %c0_76 = arith.constant 0 : index
    %231 = vector.load %arg4[%c0_75, %c0_76] : memref<32x128xf32, #tpu.memory_space<vmem>>, vector<32x128xf32>
    %cst_77 = arith.constant dense<0.000000e+00> : vector<64x128xf32>
    %232 = tpu.matmul %230, %231, %cst_77 {dimension_numbers = #tpu.dot_dimension_numbers<[1], [0], [0], [1], [0, 0, 1, 1], [], []>} : vector<64x32xf32>, vector<32x128xf32>, vector<64x128xf32> -> vector<64x128xf32>
    %c0_78 = arith.constant 0 : index
    %c0_79 = arith.constant 0 : index
    %233 = vector.load %arg6[%c0_78, %c0_79] : memref<1x128xf32, #tpu.memory_space<vmem>>, vector<1x128xf32>
    %234 = vector.broadcast %233 : vector<1x128xf32> to vector<64x128xf32>
    %235 = arith.addf %232, %234 : vector<64x128xf32>
    %c0_80 = arith.constant 0 : index
    %c0_81 = arith.constant 0 : index
    %236 = vector.load %arg10[%c0_80, %c0_81] : memref<64x128xf32, #tpu.memory_space<vmem>>, vector<64x128xf32>
    tpu.vector_store %arg10[%c0_80, %c0_81], %235 {strides = array<i32>} : memref<64x128xf32, #tpu.memory_space<vmem>>, vector<64x128xf32>,
    %c0_82 = arith.constant 0 : index
    %c0_83 = arith.constant 0 : index
    %237 = vector.load %arg5[%c0_82, %c0_83] : memref<32x128xf32, #tpu.memory_space<vmem>>, vector<32x128xf32>
    %cst_84 = arith.constant 0.000000e+00 : f32
    %238 = vector.broadcast %cst_84 : f32 to vector<8x32xf32>
    %cst_85 = arith.constant 0.000000e+00 : f32
    %239 = vector.broadcast %cst_85 : f32 to vector<8x32xf32>
    %c0_i32_86 = arith.constant 0 : i32
    %c8_i32_87 = arith.constant 8 : i32
    %240 = arith.muli %c0_i32_86, %c8_i32_87 : i32
    %241 = tpu.assume_multiple %240, 8 : i32
    %242 = arith.index_cast %241 : i32 to index
    %c0_88 = arith.constant 0 : index
    %243 = vector.load %arg10[%242, %c0_88] : memref<64x128xf32, #tpu.memory_space<vmem>>, vector<8x128xf32>
    %cst_89 = arith.constant dense<0.000000e+00> : vector<8x128xf32>
    %244 = tpu.matmul %238, %237, %cst_89 {dimension_numbers = #tpu.dot_dimension_numbers<[1], [0], [0], [1], [0, 0, 1, 1], [], []>} : vector<8x32xf32>, vector<32x128xf32>, vector<8x128xf32> -> vector<8x128xf32>
    %245 = arith.addf %243, %244 : vector<8x128xf32>
    %cst_90 = arith.constant 5.000000e-01 : f32
    %246 = vector.broadcast %cst_90 : f32 to vector<8x128xf32>
    %247 = arith.mulf %246, %245 : vector<8x128xf32>
    %248 = arith.select %5, %245, %247 : vector<8x128xi1>, vector<8x128xf32>
    %249 = math.tanh %248 : vector<8x128xf32>
    %cst_91 = arith.constant 5.000000e-01 : f32
    %250 = vector.broadcast %cst_91 : f32 to vector<8x128xf32>
    %251 = arith.mulf %250, %249 : vector<8x128xf32>
    %cst_92 = arith.constant 5.000000e-01 : f32
    %252 = vector.broadcast %cst_92 : f32 to vector<8x128xf32>
    %253 = arith.addf %251, %252 : vector<8x128xf32>
    %254 = arith.select %5, %249, %253 : vector<8x128xi1>, vector<8x128xf32>
    %255 = vector.extract_strided_slice %254 {offsets = [0, 0], sizes = [8, 32], strides = [1, 1]} : vector<8x128xf32> to vector<8x32xf32>
    %256 = vector.extract_strided_slice %254 {offsets = [0, 32], sizes = [8, 32], strides = [1, 1]} : vector<8x128xf32> to vector<8x32xf32>
    %257 = vector.extract_strided_slice %254 {offsets = [0, 64], sizes = [8, 32], strides = [1, 1]} : vector<8x128xf32> to vector<8x32xf32>
    %258 = vector.extract_strided_slice %254 {offsets = [0, 96], sizes = [8, 32], strides = [1, 1]} : vector<8x128xf32> to vector<8x32xf32>
    %259 = arith.mulf %256, %239 : vector<8x32xf32>
    %260 = arith.mulf %255, %257 : vector<8x32xf32>
    %261 = arith.addf %259, %260 : vector<8x32xf32>
    %262 = math.tanh %261 : vector<8x32xf32>
    %263 = arith.mulf %258, %262 : vector<8x32xf32>
    %264 = arith.index_cast %241 : i32 to index
    %c0_93 = arith.constant 0 : index
    %265 = vector.load %arg7[%264, %c0_93] : memref<64x32xf32, #tpu.memory_space<vmem>>, vector<8x32xf32>
    tpu.vector_store %arg7[%264, %c0_93], %263 {strides = array<i32>} : memref<64x32xf32, #tpu.memory_space<vmem>>, vector<8x32xf32>,
    %c1_i32_94 = arith.constant 1 : i32
    %c8_i32_95 = arith.constant 8 : i32
    %266 = arith.muli %c1_i32_94, %c8_i32_95 : i32
    %267 = tpu.assume_multiple %266, 8 : i32
    %268 = arith.index_cast %267 : i32 to index
    %c0_96 = arith.constant 0 : index
    %269 = vector.load %arg10[%268, %c0_96] : memref<64x128xf32, #tpu.memory_space<vmem>>, vector<8x128xf32>
    %cst_97 = arith.constant dense<0.000000e+00> : vector<8x128xf32>
    %270 = tpu.matmul %263, %237, %cst_97 {dimension_numbers = #tpu.dot_dimension_numbers<[1], [0], [0], [1], [0, 0, 1, 1], [], []>} : vector<8x32xf32>, vector<32x128xf32>, vector<8x128xf32> -> vector<8x128xf32>
    %271 = arith.addf %269, %270 : vector<8x128xf32>
    %cst_98 = arith.constant 5.000000e-01 : f32
    %272 = vector.broadcast %cst_98 : f32 to vector<8x128xf32>
    %273 = arith.mulf %272, %271 : vector<8x128xf32>
    %274 = arith.select %5, %271, %273 : vector<8x128xi1>, vector<8x128xf32>
    %275 = math.tanh %274 : vector<8x128xf32>
    %cst_99 = arith.constant 5.000000e-01 : f32
    %276 = vector.broadcast %cst_99 : f32 to vector<8x128xf32>
    %277 = arith.mulf %276, %275 : vector<8x128xf32>
    %cst_100 = arith.constant 5.000000e-01 : f32
    %278 = vector.broadcast %cst_100 : f32 to vector<8x128xf32>
    %279 = arith.addf %277, %278 : vector<8x128xf32>
    %280 = arith.select %5, %275, %279 : vector<8x128xi1>, vector<8x128xf32>
    %281 = vector.extract_strided_slice %280 {offsets = [0, 0], sizes = [8, 32], strides = [1, 1]} : vector<8x128xf32> to vector<8x32xf32>
    %282 = vector.extract_strided_slice %280 {offsets = [0, 32], sizes = [8, 32], strides = [1, 1]} : vector<8x128xf32> to vector<8x32xf32>
    %283 = vector.extract_strided_slice %280 {offsets = [0, 64], sizes = [8, 32], strides = [1, 1]} : vector<8x128xf32> to vector<8x32xf32>
    %284 = vector.extract_strided_slice %280 {offsets = [0, 96], sizes = [8, 32], strides = [1, 1]} : vector<8x128xf32> to vector<8x32xf32>
    %285 = arith.mulf %282, %261 : vector<8x32xf32>
    %286 = arith.mulf %281, %283 : vector<8x32xf32>
    %287 = arith.addf %285, %286 : vector<8x32xf32>
    %288 = math.tanh %287 : vector<8x32xf32>
    %289 = arith.mulf %284, %288 : vector<8x32xf32>
    %290 = arith.index_cast %267 : i32 to index
    %c0_101 = arith.constant 0 : index
    %291 = vector.load %arg7[%290, %c0_101] : memref<64x32xf32, #tpu.memory_space<vmem>>, vector<8x32xf32>
    tpu.vector_store %arg7[%290, %c0_101], %289 {strides = array<i32>} : memref<64x32xf32, #tpu.memory_space<vmem>>, vector<8x32xf32>,
    %c2_i32_102 = arith.constant 2 : i32
    %c8_i32_103 = arith.constant 8 : i32
    %292 = arith.muli %c2_i32_102, %c8_i32_103 : i32
    %293 = tpu.assume_multiple %292, 8 : i32
    %294 = arith.index_cast %293 : i32 to index
    %c0_104 = arith.constant 0 : index
    %295 = vector.load %arg10[%294, %c0_104] : memref<64x128xf32, #tpu.memory_space<vmem>>, vector<8x128xf32>
    %cst_105 = arith.constant dense<0.000000e+00> : vector<8x128xf32>
    %296 = tpu.matmul %289, %237, %cst_105 {dimension_numbers = #tpu.dot_dimension_numbers<[1], [0], [0], [1], [0, 0, 1, 1], [], []>} : vector<8x32xf32>, vector<32x128xf32>, vector<8x128xf32> -> vector<8x128xf32>
    %297 = arith.addf %295, %296 : vector<8x128xf32>
    %cst_106 = arith.constant 5.000000e-01 : f32
    %298 = vector.broadcast %cst_106 : f32 to vector<8x128xf32>
    %299 = arith.mulf %298, %297 : vector<8x128xf32>
    %300 = arith.select %5, %297, %299 : vector<8x128xi1>, vector<8x128xf32>
    %301 = math.tanh %300 : vector<8x128xf32>
    %cst_107 = arith.constant 5.000000e-01 : f32
    %302 = vector.broadcast %cst_107 : f32 to vector<8x128xf32>
    %303 = arith.mulf %302, %301 : vector<8x128xf32>
    %cst_108 = arith.constant 5.000000e-01 : f32
    %304 = vector.broadcast %cst_108 : f32 to vector<8x128xf32>
    %305 = arith.addf %303, %304 : vector<8x128xf32>
    %306 = arith.select %5, %301, %305 : vector<8x128xi1>, vector<8x128xf32>
    %307 = vector.extract_strided_slice %306 {offsets = [0, 0], sizes = [8, 32], strides = [1, 1]} : vector<8x128xf32> to vector<8x32xf32>
    %308 = vector.extract_strided_slice %306 {offsets = [0, 32], sizes = [8, 32], strides = [1, 1]} : vector<8x128xf32> to vector<8x32xf32>
    %309 = vector.extract_strided_slice %306 {offsets = [0, 64], sizes = [8, 32], strides = [1, 1]} : vector<8x128xf32> to vector<8x32xf32>
    %310 = vector.extract_strided_slice %306 {offsets = [0, 96], sizes = [8, 32], strides = [1, 1]} : vector<8x128xf32> to vector<8x32xf32>
    %311 = arith.mulf %308, %287 : vector<8x32xf32>
    %312 = arith.mulf %307, %309 : vector<8x32xf32>
    %313 = arith.addf %311, %312 : vector<8x32xf32>
    %314 = math.tanh %313 : vector<8x32xf32>
    %315 = arith.mulf %310, %314 : vector<8x32xf32>
    %316 = arith.index_cast %293 : i32 to index
    %c0_109 = arith.constant 0 : index
    %317 = vector.load %arg7[%316, %c0_109] : memref<64x32xf32, #tpu.memory_space<vmem>>, vector<8x32xf32>
    tpu.vector_store %arg7[%316, %c0_109], %315 {strides = array<i32>} : memref<64x32xf32, #tpu.memory_space<vmem>>, vector<8x32xf32>,
    %c3_i32_110 = arith.constant 3 : i32
    %c8_i32_111 = arith.constant 8 : i32
    %318 = arith.muli %c3_i32_110, %c8_i32_111 : i32
    %319 = tpu.assume_multiple %318, 8 : i32
    %320 = arith.index_cast %319 : i32 to index
    %c0_112 = arith.constant 0 : index
    %321 = vector.load %arg10[%320, %c0_112] : memref<64x128xf32, #tpu.memory_space<vmem>>, vector<8x128xf32>
    %cst_113 = arith.constant dense<0.000000e+00> : vector<8x128xf32>
    %322 = tpu.matmul %315, %237, %cst_113 {dimension_numbers = #tpu.dot_dimension_numbers<[1], [0], [0], [1], [0, 0, 1, 1], [], []>} : vector<8x32xf32>, vector<32x128xf32>, vector<8x128xf32> -> vector<8x128xf32>
    %323 = arith.addf %321, %322 : vector<8x128xf32>
    %cst_114 = arith.constant 5.000000e-01 : f32
    %324 = vector.broadcast %cst_114 : f32 to vector<8x128xf32>
    %325 = arith.mulf %324, %323 : vector<8x128xf32>
    %326 = arith.select %5, %323, %325 : vector<8x128xi1>, vector<8x128xf32>
    %327 = math.tanh %326 : vector<8x128xf32>
    %cst_115 = arith.constant 5.000000e-01 : f32
    %328 = vector.broadcast %cst_115 : f32 to vector<8x128xf32>
    %329 = arith.mulf %328, %327 : vector<8x128xf32>
    %cst_116 = arith.constant 5.000000e-01 : f32
    %330 = vector.broadcast %cst_116 : f32 to vector<8x128xf32>
    %331 = arith.addf %329, %330 : vector<8x128xf32>
    %332 = arith.select %5, %327, %331 : vector<8x128xi1>, vector<8x128xf32>
    %333 = vector.extract_strided_slice %332 {offsets = [0, 0], sizes = [8, 32], strides = [1, 1]} : vector<8x128xf32> to vector<8x32xf32>
    %334 = vector.extract_strided_slice %332 {offsets = [0, 32], sizes = [8, 32], strides = [1, 1]} : vector<8x128xf32> to vector<8x32xf32>
    %335 = vector.extract_strided_slice %332 {offsets = [0, 64], sizes = [8, 32], strides = [1, 1]} : vector<8x128xf32> to vector<8x32xf32>
    %336 = vector.extract_strided_slice %332 {offsets = [0, 96], sizes = [8, 32], strides = [1, 1]} : vector<8x128xf32> to vector<8x32xf32>
    %337 = arith.mulf %334, %313 : vector<8x32xf32>
    %338 = arith.mulf %333, %335 : vector<8x32xf32>
    %339 = arith.addf %337, %338 : vector<8x32xf32>
    %340 = math.tanh %339 : vector<8x32xf32>
    %341 = arith.mulf %336, %340 : vector<8x32xf32>
    %342 = arith.index_cast %319 : i32 to index
    %c0_117 = arith.constant 0 : index
    %343 = vector.load %arg7[%342, %c0_117] : memref<64x32xf32, #tpu.memory_space<vmem>>, vector<8x32xf32>
    tpu.vector_store %arg7[%342, %c0_117], %341 {strides = array<i32>} : memref<64x32xf32, #tpu.memory_space<vmem>>, vector<8x32xf32>,
    %c4_i32_118 = arith.constant 4 : i32
    %c8_i32_119 = arith.constant 8 : i32
    %344 = arith.muli %c4_i32_118, %c8_i32_119 : i32
    %345 = tpu.assume_multiple %344, 8 : i32
    %346 = arith.index_cast %345 : i32 to index
    %c0_120 = arith.constant 0 : index
    %347 = vector.load %arg10[%346, %c0_120] : memref<64x128xf32, #tpu.memory_space<vmem>>, vector<8x128xf32>
    %cst_121 = arith.constant dense<0.000000e+00> : vector<8x128xf32>
    %348 = tpu.matmul %341, %237, %cst_121 {dimension_numbers = #tpu.dot_dimension_numbers<[1], [0], [0], [1], [0, 0, 1, 1], [], []>} : vector<8x32xf32>, vector<32x128xf32>, vector<8x128xf32> -> vector<8x128xf32>
    %349 = arith.addf %347, %348 : vector<8x128xf32>
    %cst_122 = arith.constant 5.000000e-01 : f32
    %350 = vector.broadcast %cst_122 : f32 to vector<8x128xf32>
    %351 = arith.mulf %350, %349 : vector<8x128xf32>
    %352 = arith.select %5, %349, %351 : vector<8x128xi1>, vector<8x128xf32>
    %353 = math.tanh %352 : vector<8x128xf32>
    %cst_123 = arith.constant 5.000000e-01 : f32
    %354 = vector.broadcast %cst_123 : f32 to vector<8x128xf32>
    %355 = arith.mulf %354, %353 : vector<8x128xf32>
    %cst_124 = arith.constant 5.000000e-01 : f32
    %356 = vector.broadcast %cst_124 : f32 to vector<8x128xf32>
    %357 = arith.addf %355, %356 : vector<8x128xf32>
    %358 = arith.select %5, %353, %357 : vector<8x128xi1>, vector<8x128xf32>
    %359 = vector.extract_strided_slice %358 {offsets = [0, 0], sizes = [8, 32], strides = [1, 1]} : vector<8x128xf32> to vector<8x32xf32>
    %360 = vector.extract_strided_slice %358 {offsets = [0, 32], sizes = [8, 32], strides = [1, 1]} : vector<8x128xf32> to vector<8x32xf32>
    %361 = vector.extract_strided_slice %358 {offsets = [0, 64], sizes = [8, 32], strides = [1, 1]} : vector<8x128xf32> to vector<8x32xf32>
    %362 = vector.extract_strided_slice %358 {offsets = [0, 96], sizes = [8, 32], strides = [1, 1]} : vector<8x128xf32> to vector<8x32xf32>
    %363 = arith.mulf %360, %339 : vector<8x32xf32>
    %364 = arith.mulf %359, %361 : vector<8x32xf32>
    %365 = arith.addf %363, %364 : vector<8x32xf32>
    %366 = math.tanh %365 : vector<8x32xf32>
    %367 = arith.mulf %362, %366 : vector<8x32xf32>
    %368 = arith.index_cast %345 : i32 to index
    %c0_125 = arith.constant 0 : index
    %369 = vector.load %arg7[%368, %c0_125] : memref<64x32xf32, #tpu.memory_space<vmem>>, vector<8x32xf32>
    tpu.vector_store %arg7[%368, %c0_125], %367 {strides = array<i32>} : memref<64x32xf32, #tpu.memory_space<vmem>>, vector<8x32xf32>,
    %c5_i32_126 = arith.constant 5 : i32
    %c8_i32_127 = arith.constant 8 : i32
    %370 = arith.muli %c5_i32_126, %c8_i32_127 : i32
    %371 = tpu.assume_multiple %370, 8 : i32
    %372 = arith.index_cast %371 : i32 to index
    %c0_128 = arith.constant 0 : index
    %373 = vector.load %arg10[%372, %c0_128] : memref<64x128xf32, #tpu.memory_space<vmem>>, vector<8x128xf32>
    %cst_129 = arith.constant dense<0.000000e+00> : vector<8x128xf32>
    %374 = tpu.matmul %367, %237, %cst_129 {dimension_numbers = #tpu.dot_dimension_numbers<[1], [0], [0], [1], [0, 0, 1, 1], [], []>} : vector<8x32xf32>, vector<32x128xf32>, vector<8x128xf32> -> vector<8x128xf32>
    %375 = arith.addf %373, %374 : vector<8x128xf32>
    %cst_130 = arith.constant 5.000000e-01 : f32
    %376 = vector.broadcast %cst_130 : f32 to vector<8x128xf32>
    %377 = arith.mulf %376, %375 : vector<8x128xf32>
    %378 = arith.select %5, %375, %377 : vector<8x128xi1>, vector<8x128xf32>
    %379 = math.tanh %378 : vector<8x128xf32>
    %cst_131 = arith.constant 5.000000e-01 : f32
    %380 = vector.broadcast %cst_131 : f32 to vector<8x128xf32>
    %381 = arith.mulf %380, %379 : vector<8x128xf32>
    %cst_132 = arith.constant 5.000000e-01 : f32
    %382 = vector.broadcast %cst_132 : f32 to vector<8x128xf32>
    %383 = arith.addf %381, %382 : vector<8x128xf32>
    %384 = arith.select %5, %379, %383 : vector<8x128xi1>, vector<8x128xf32>
    %385 = vector.extract_strided_slice %384 {offsets = [0, 0], sizes = [8, 32], strides = [1, 1]} : vector<8x128xf32> to vector<8x32xf32>
    %386 = vector.extract_strided_slice %384 {offsets = [0, 32], sizes = [8, 32], strides = [1, 1]} : vector<8x128xf32> to vector<8x32xf32>
    %387 = vector.extract_strided_slice %384 {offsets = [0, 64], sizes = [8, 32], strides = [1, 1]} : vector<8x128xf32> to vector<8x32xf32>
    %388 = vector.extract_strided_slice %384 {offsets = [0, 96], sizes = [8, 32], strides = [1, 1]} : vector<8x128xf32> to vector<8x32xf32>
    %389 = arith.mulf %386, %365 : vector<8x32xf32>
    %390 = arith.mulf %385, %387 : vector<8x32xf32>
    %391 = arith.addf %389, %390 : vector<8x32xf32>
    %392 = math.tanh %391 : vector<8x32xf32>
    %393 = arith.mulf %388, %392 : vector<8x32xf32>
    %394 = arith.index_cast %371 : i32 to index
    %c0_133 = arith.constant 0 : index
    %395 = vector.load %arg7[%394, %c0_133] : memref<64x32xf32, #tpu.memory_space<vmem>>, vector<8x32xf32>
    tpu.vector_store %arg7[%394, %c0_133], %393 {strides = array<i32>} : memref<64x32xf32, #tpu.memory_space<vmem>>, vector<8x32xf32>,
    %c6_i32_134 = arith.constant 6 : i32
    %c8_i32_135 = arith.constant 8 : i32
    %396 = arith.muli %c6_i32_134, %c8_i32_135 : i32
    %397 = tpu.assume_multiple %396, 8 : i32
    %398 = arith.index_cast %397 : i32 to index
    %c0_136 = arith.constant 0 : index
    %399 = vector.load %arg10[%398, %c0_136] : memref<64x128xf32, #tpu.memory_space<vmem>>, vector<8x128xf32>
    %cst_137 = arith.constant dense<0.000000e+00> : vector<8x128xf32>
    %400 = tpu.matmul %393, %237, %cst_137 {dimension_numbers = #tpu.dot_dimension_numbers<[1], [0], [0], [1], [0, 0, 1, 1], [], []>} : vector<8x32xf32>, vector<32x128xf32>, vector<8x128xf32> -> vector<8x128xf32>
    %401 = arith.addf %399, %400 : vector<8x128xf32>
    %cst_138 = arith.constant 5.000000e-01 : f32
    %402 = vector.broadcast %cst_138 : f32 to vector<8x128xf32>
    %403 = arith.mulf %402, %401 : vector<8x128xf32>
    %404 = arith.select %5, %401, %403 : vector<8x128xi1>, vector<8x128xf32>
    %405 = math.tanh %404 : vector<8x128xf32>
    %cst_139 = arith.constant 5.000000e-01 : f32
    %406 = vector.broadcast %cst_139 : f32 to vector<8x128xf32>
    %407 = arith.mulf %406, %405 : vector<8x128xf32>
    %cst_140 = arith.constant 5.000000e-01 : f32
    %408 = vector.broadcast %cst_140 : f32 to vector<8x128xf32>
    %409 = arith.addf %407, %408 : vector<8x128xf32>
    %410 = arith.select %5, %405, %409 : vector<8x128xi1>, vector<8x128xf32>
    %411 = vector.extract_strided_slice %410 {offsets = [0, 0], sizes = [8, 32], strides = [1, 1]} : vector<8x128xf32> to vector<8x32xf32>
    %412 = vector.extract_strided_slice %410 {offsets = [0, 32], sizes = [8, 32], strides = [1, 1]} : vector<8x128xf32> to vector<8x32xf32>
    %413 = vector.extract_strided_slice %410 {offsets = [0, 64], sizes = [8, 32], strides = [1, 1]} : vector<8x128xf32> to vector<8x32xf32>
    %414 = vector.extract_strided_slice %410 {offsets = [0, 96], sizes = [8, 32], strides = [1, 1]} : vector<8x128xf32> to vector<8x32xf32>
    %415 = arith.mulf %412, %391 : vector<8x32xf32>
    %416 = arith.mulf %411, %413 : vector<8x32xf32>
    %417 = arith.addf %415, %416 : vector<8x32xf32>
    %418 = math.tanh %417 : vector<8x32xf32>
    %419 = arith.mulf %414, %418 : vector<8x32xf32>
    %420 = arith.index_cast %397 : i32 to index
    %c0_141 = arith.constant 0 : index
    %421 = vector.load %arg7[%420, %c0_141] : memref<64x32xf32, #tpu.memory_space<vmem>>, vector<8x32xf32>
    tpu.vector_store %arg7[%420, %c0_141], %419 {strides = array<i32>} : memref<64x32xf32, #tpu.memory_space<vmem>>, vector<8x32xf32>,
    %c7_i32_142 = arith.constant 7 : i32
    %c8_i32_143 = arith.constant 8 : i32
    %422 = arith.muli %c7_i32_142, %c8_i32_143 : i32
    %423 = tpu.assume_multiple %422, 8 : i32
    %424 = arith.index_cast %423 : i32 to index
    %c0_144 = arith.constant 0 : index
    %425 = vector.load %arg10[%424, %c0_144] : memref<64x128xf32, #tpu.memory_space<vmem>>, vector<8x128xf32>
    %cst_145 = arith.constant dense<0.000000e+00> : vector<8x128xf32>
    %426 = tpu.matmul %419, %237, %cst_145 {dimension_numbers = #tpu.dot_dimension_numbers<[1], [0], [0], [1], [0, 0, 1, 1], [], []>} : vector<8x32xf32>, vector<32x128xf32>, vector<8x128xf32> -> vector<8x128xf32>
    %427 = arith.addf %425, %426 : vector<8x128xf32>
    %cst_146 = arith.constant 5.000000e-01 : f32
    %428 = vector.broadcast %cst_146 : f32 to vector<8x128xf32>
    %429 = arith.mulf %428, %427 : vector<8x128xf32>
    %430 = arith.select %5, %427, %429 : vector<8x128xi1>, vector<8x128xf32>
    %431 = math.tanh %430 : vector<8x128xf32>
    %cst_147 = arith.constant 5.000000e-01 : f32
    %432 = vector.broadcast %cst_147 : f32 to vector<8x128xf32>
    %433 = arith.mulf %432, %431 : vector<8x128xf32>
    %cst_148 = arith.constant 5.000000e-01 : f32
    %434 = vector.broadcast %cst_148 : f32 to vector<8x128xf32>
    %435 = arith.addf %433, %434 : vector<8x128xf32>
    %436 = arith.select %5, %431, %435 : vector<8x128xi1>, vector<8x128xf32>
    %437 = vector.extract_strided_slice %436 {offsets = [0, 0], sizes = [8, 32], strides = [1, 1]} : vector<8x128xf32> to vector<8x32xf32>
    %438 = vector.extract_strided_slice %436 {offsets = [0, 32], sizes = [8, 32], strides = [1, 1]} : vector<8x128xf32> to vector<8x32xf32>
    %439 = vector.extract_strided_slice %436 {offsets = [0, 64], sizes = [8, 32], strides = [1, 1]} : vector<8x128xf32> to vector<8x32xf32>
    %440 = vector.extract_strided_slice %436 {offsets = [0, 96], sizes = [8, 32], strides = [1, 1]} : vector<8x128xf32> to vector<8x32xf32>
    %441 = arith.mulf %438, %417 : vector<8x32xf32>
    %442 = arith.mulf %437, %439 : vector<8x32xf32>
    %443 = arith.addf %441, %442 : vector<8x32xf32>
    %444 = math.tanh %443 : vector<8x32xf32>
    %445 = arith.mulf %440, %444 : vector<8x32xf32>
    %446 = arith.index_cast %423 : i32 to index
    %c0_149 = arith.constant 0 : index
    %447 = vector.load %arg7[%446, %c0_149] : memref<64x32xf32, #tpu.memory_space<vmem>>, vector<8x32xf32>
    tpu.vector_store %arg7[%446, %c0_149], %445 {strides = array<i32>} : memref<64x32xf32, #tpu.memory_space<vmem>>, vector<8x32xf32>,
    %c8_i32_150 = arith.constant 8 : i32
    %c1 = arith.constant 1 : index
    %c0_151 = arith.constant 0 : index
    %c0_152 = arith.constant 0 : index
    %448 = vector.load %arg8[%c1, %c0_151, %c0_152] : memref<2x8x32xf32, #tpu.memory_space<vmem>>, vector<1x8x32xf32>
    %449 = vector.shape_cast %448 : vector<1x8x32xf32> to vector<8x32xf32>
    %450 = vector.shape_cast %445 : vector<8x32xf32> to vector<1x8x32xf32>
    tpu.vector_store %arg8[%c1, %c0_151, %c0_152], %450 {strides = array<i32>} : memref<2x8x32xf32, #tpu.memory_space<vmem>>, vector<1x8x32xf32>,
    %c1_153 = arith.constant 1 : index
    %c0_154 = arith.constant 0 : index
    %c0_155 = arith.constant 0 : index
    %451 = vector.load %arg9[%c1_153, %c0_154, %c0_155] : memref<2x8x32xf32, #tpu.memory_space<vmem>>, vector<1x8x32xf32>
    %452 = vector.shape_cast %451 : vector<1x8x32xf32> to vector<8x32xf32>
    %453 = vector.shape_cast %443 : vector<8x32xf32> to vector<1x8x32xf32>
    tpu.vector_store %arg9[%c1_153, %c0_154, %c0_155], %453 {strides = array<i32>} : memref<2x8x32xf32, #tpu.memory_space<vmem>>, vector<1x8x32xf32>,
    return
  }
}

</mosaic_0001>

<bundles_post_ra>
// kernel: forward.1
= control target key start
LH: loop header
LB: loop body
LE: loop exit
PB: predicated region body
PF: predicated region fallthrough
CT: control target
= control target key end

     0   :  { %vm76_vm0 = vcmask 1041408   ;;  %vm51_vm1 = vcmask 80896   ;;  %v2573_v0 = vmov 0.0|0.0   ;;  %vm2574_vm2 = vmmov 1   ;;  %s2578_s25 = smov 32   ;;  %s3087_s1 = inlined_call_operand.vmem [shape: f32[10,128], index: 1, kind: input, shape index: {}]   ;;  %s3088_s2 = inlined_call_operand.vmem [shape: f32[32,128], index: 2, kind: input, shape index: {}]   ;;  %s3089_s0 = inlined_call_operand.vmem [shape: f32[64,10], index: 0, kind: input, shape index: {}]   ;;  %s3090_s3 = inlined_call_operand.vmem [shape: f32[1,128], index: 3, kind: input, shape index: {}]   ;;  %s3091_s4 = inlined_call_operand.vmem [shape: f32[32,128], index: 4, kind: input, shape index: {}]   ;;  %s3092_s5 = inlined_call_operand.vmem [shape: f32[32,128], index: 5, kind: input, shape index: {}]   ;;  %s3093_s6 = inlined_call_operand.vmem [shape: f32[1,128], index: 6, kind: input, shape index: {}]   ;;  %s3094_s7 = inlined_call_operand.vmem [shape: f32[64,32], index: 7, kind: output, shape index: {0}]   ;;  %s3095_s8 = inlined_call_operand.vmem [shape: f32[2,8,32], index: 8, kind: output, shape index: {1}]   ;;  %s3096_s9 = inlined_call_operand.vmem [shape: f32[2,8,32], index: 9, kind: output, shape index: {2}]  }
   0x1   :  { %2398 = vmatprep.subr.bf16.mxu1 %v2573_v0  ;;  %v42_v1 = vld [vmem:[%s3087_s1] sm:$0xff]  ;;  %v43_v2 = vld [vmem:[%s3087_s1 + $0x8] sm:$0x3]  ;;  %vm2393_vm3 = vmpackc.low %vm76_vm0, %vm2574_vm2  ;;  %vm2575_vm4 = vmmov 0   ;;  %v2576_v7 = vmov 0.0   ;;  %v29_v13 = vlaneseq  ;;  %vm198_vm8 = vcmask 261120  }
   0x2   :  { %v2392_v3 = vpack.c.bf16 %v43_v2, %v42_v1  ;;  %v193_v4 = vld [vmem:[%s3088_s2] sm:$0xff]  ;;  %v194_v5 = vld [vmem:[%s3088_s2 + $0x8] sm:$0xff]  ;;  %2204 = vmatprep.mubr.msk.f32.mxu1 %vm2575_vm4, %v2576_v7  ;;  %v195_v9 = vld [vmem:[%s3088_s2 + $0x10] sm:$0xff] }
   0x3   :  { %v34_v6 = vld [vmem:[%s3089_s0] sm:$0xff]  ;;  %v2648_v8 = vpack.c.bf16 %v194_v5, %v193_v4  ;;  %v196_v10 = vld [vmem:[%s3088_s2 + $0x18] sm:$0xff]  ;;  %v35_v11 = vld [vmem:[%s3089_s0 + $0x8] sm:$0xff]  ;;  %v30_v15 = vand.u32 127, %v29_v13 }
   0x4   :  { %2184 = vmatprep.mubr.msk.f32.mxu0 %vm51_vm1, %v34_v6  ;;  %2394 = vmatprep.subr.msk.bf16.mxu0 %vm2393_vm3, %v2392_v3  ;;  %v2661_v12 = vpack.c.bf16 %v196_v10, %v195_v9  ;;  %v2682_v14 = vld [vmem:[%s3090_s3] ss:$0 sm:$0xff]  ;;  %s2577_s3 = smov 64   ;;  %v36_v53 = vld [vmem:[%s3089_s0 + $0x10] sm:$0xff]  ;;  %v37_v54 = vld [vmem:[%s3089_s0 + $0x18] sm:$0xff] }
   0x5   :  { %2400 = vmatpush3.bf16.msra.mxu1 %v2648_v8  ;;  %2397 = vmatpush3.bf16.msk.msra.mxu0 %vm2393_vm3, %v2392_v3  ;;  %vm31_vm5 = vcmp.ge.s32.totalorder %v30_v15, 64  ;;  %vm32_vm6 = vcmp.lt.s32.totalorder %v30_v15, 96  ;;  %v38_v55 = vld [vmem:[%s3089_s0 + $0x20] sm:$0xff]  ;;  %v39_v56 = vld [vmem:[%s3089_s0 + $0x28] sm:$0xff]  ;;  %v40_v57 = vld [vmem:[%s3089_s0 + $0x30] sm:$0xff] }
   0x6   :  { %2401 = vmatprep.subr.bf16.mxu1 %v2573_v0  ;;  %2410 = vmatprep.subr.bf16.mxu0 %v2573_v0  ;;  %vm2685_vm7 = vmand %vm31_vm5, %vm32_vm6  ;;  %v41_v58 = vld [vmem:[%s3089_s0 + $0x38] sm:$0xff] }
   0x8   :  { %2185 = vmatmul.mubr.msk.f32.vlgmr.msra.gmra.mrb[0].mxu0 %vm51_vm1, %v35_v11 }
   0x9   :  { %2403 = vmatpush3.bf16.msra.mxu1 %v2661_v12  ;;  %2412 = vmatpush3.bf16.msra.mxu0 %v2648_v8 }
   0xa   :  { %2404 = vmatprep.subr.bf16.mxu1 %v2573_v0  ;;  %2413 = vmatprep.subr.bf16.mxu0 %v2573_v0 }
   0xb   :  { %2187 = vmatprep.mubr.msk.f32.mxu0 %vm51_vm1, %v36_v53 }
   0xc   :  { %2205 = vmatmul.mubr.f32.vlgmr.msra.gmra.mrb[0].mxu1 %v2576_v7  ;;  %2188 = vmatmul.mubr.msk.f32.gmra.mrb[2].mxu0 %vm51_vm1, %v37_v54 }
   0xd   :  { %2406 = vmatpush3.bf16.msra.mxu1 %v2648_v8  ;;  %2215 = vmatprep.mubr.msk.f32.mxu1 %vm2575_vm4, %v2576_v7 }
   0xe   :  { %2407 = vmatprep.subr.bf16.mxu1 %v2573_v0  ;;  %2415 = vmatpush3.bf16.msra.mxu0 %v2661_v12 }
   0xf   :  { %2422 = vmatprep.subr.bf16.mxu0 %v2573_v0  ;;  %2190 = vmatprep.mubr.msk.f32.mxu0 %vm51_vm1, %v38_v55 }
  0x10   :  { %2191 = vmatmul.mubr.msk.f32.gmra.mrb[4].mxu0 %vm51_vm1, %v39_v56 }
  0x11   :  { %2409 = vmatpush3.bf16.msra.mxu1 %v2661_v12  ;;  %2193 = vmatprep.mubr.msk.f32.mxu0 %vm51_vm1, %v40_v57 }
  0x12   :  { %2416 = vmatprep.subr.bf16.mxu1 %v2573_v0 }
  0x14   :  { %2194 = vmatmul.mubr.msk.f32.gmra.mrb[6].mxu0 %vm51_vm1, %v41_v58 }
  0x15   :  { %2226 = vmatprep.mubr.msk.f32.mxu0 %vm2575_vm4, %v2576_v7 }
  0xdb   :  { %v2186_v16 = vpop.f32.mrb[0].mxu0 }
  0xdc   :  { %v146_v17 = vpop.f32.mrb[1].mxu0  ;;  %v152_v38 = vadd.f32 %v2186_v16, %v2682_v14 }
  0xdd   :  { %v147_v18 = vadd.f32 %v2682_v14, %v146_v17 }
  0xdf   :  { %v268_v19 = vpop.f32.mrb[0].mxu1  ;;  %v2189_v62 = vpop.f32.mrb[2].mxu0 }
  0xe0   :  { %v272_v20 = vadd.f32 %v268_v19, %v147_v18  ;;  %v2206_v21 = vpop.f32.mrb[1].mxu1  ;;  %v156_v63 = vpop.f32.mrb[3].mxu0 }
  0xe1   :  { %v157_v6 = vadd.f32 %v2682_v14, %v156_v63 }
  0xe2   :  { %v273_v23 = vmul.f32 0.5, %v272_v20 }
  0xe3   :  { %v2740_v1 = vpop.f32.mrb[4].mxu0 }
  0xe4   :  { %v274_v24 = vsel %vm2685_vm7, %v272_v20, %v273_v23  ;;  %v2742_v2 = vpop.f32.mrb[5].mxu0 }
  0xe5   :  { %2509 = vtanh.f32 %v274_v24 }
  0xe7   :  { %v2744_v3 = vpop.f32.mrb[6].mxu0 }
  0xe8   :  { %v2746_v4 = vpop.f32.mrb[7].mxu0 }
  0xef   :  { %v2510_v25 = vpop.eup %2509 }
  0xf0   :  { %v276_v26 = vmul.f32 0.5, %v2510_v25 }
  0xf2   :  { %v277_v27 = vadd.f32 0.5, %v276_v26 }
  0xf4   :  { %v278_v28 = vsel %vm2685_vm7, %v2510_v25, %v277_v27 }
  0xf5   :  { %281 = vrot.lane.b32.xlu0 %v278_v28, %s2577_s3  ;;  %v279_v31 = vmul.f32 0.0, %v278_v28 }
 0x167   :  { %v282_v29 = vpop.permute.xlu0 %281 }
 0x168   :  { %v284_v30 = vmul.f32 %v282_v29, %v278_v28 }
 0x16a   :  { %286 = vrot.lane.b32.xlu0 %v284_v30, %s2578_s25  ;;  %v162_v30 = vadd.f32 %v2189_v62, %v2682_v14 }
 0x1dc   :  { %v287_v32 = vpop.permute.xlu0 %286 }
 0x1dd   :  { %v289_v33 = vadd.f32 %v287_v32, %v279_v31 }
 0x1df   :  { %2511 = vtanh.f32 %v289_v33 }
 0x1e9   :  { %v2512_v34 = vpop.eup %2511 }
 0x1ea   :  { %292 = vrot.lane.b32.xlu1 %v2512_v34, %s2577_s3 }
 0x25c   :  { %v293_v35 = vpop.permute.xlu1 %292 }
 0x25d   :  { %v295_v36 = vmul.f32 %v293_v35, %v278_v28 }
 0x25f   :  { %297 = vrot.lane.b32.xlu1 %v295_v36, %s2578_s25 }
 0x2d1   :  { %v298_v37 = vpop.permute.xlu1 %297 }
 0x2d2   :  { %300 = vst.msk [vmem:[#allocation3] sm:$0xff] %vm198_vm8, %v298_v37  ;;  %2216 = vmatmul.mubr.msk.f32.vlgmr.msra.gmra.mrb[2].mxu1 %vm198_vm8, %v298_v37 }
 0x2d3   :  { %2418 = vmatpush3.bf16.msra.mxu1 %v2648_v8  ;;  %2237 = vmatprep.mubr.msk.f32.mxu1 %vm2575_vm4, %v2576_v7 }
 0x2d4   :  { %2419 = vmatprep.subr.bf16.mxu1 %v2573_v0 }
 0x2d7   :  { %2421 = vmatpush3.bf16.msra.mxu1 %v2661_v12 }
 0x2d8   :  { %2428 = vmatprep.subr.bf16.mxu1 %v2573_v0 }
 0x3a5   :  { %v371_v39 = vpop.f32.mrb[2].mxu1 }
 0x3a6   :  { %v375_v40 = vadd.f32 %v371_v39, %v152_v38  ;;  %v2217_v41 = vpop.f32.mrb[3].mxu1 }
 0x3a8   :  { %v376_v42 = vmul.f32 0.5, %v375_v40 }
 0x3aa   :  { %v377_v43 = vsel %vm2685_vm7, %v375_v40, %v376_v42 }
 0x3ab   :  { %2513 = vtanh.f32 %v377_v43 }
 0x3b5   :  { %v2514_v44 = vpop.eup %2513 }
 0x3b6   :  { %v379_v45 = vmul.f32 0.5, %v2514_v44 }
 0x3b8   :  { %v380_v46 = vadd.f32 0.5, %v379_v45 }
 0x3ba   :  { %v381_v47 = vsel %vm2685_vm7, %v2514_v44, %v380_v46 }
 0x3bb   :  { %384 = vrot.lane.b32.xlu0 %v381_v47, %s2577_s3  ;;  %v382_v50 = vmul.f32 %v381_v47, %v289_v33 }
 0x42d   :  { %v385_v48 = vpop.permute.xlu0 %384 }
 0x42e   :  { %v387_v49 = vmul.f32 %v385_v48, %v381_v47 }
 0x430   :  { %389 = vrot.lane.b32.xlu1 %v387_v49, %s2578_s25  ;;  %v167_v49 = vadd.f32 %v2682_v14, %v2742_v2 }
 0x4a2   :  { %v390_v51 = vpop.permute.xlu1 %389 }
 0x4a3   :  { %v392_v52 = vadd.f32 %v390_v51, %v382_v50 }
 0x4a5   :  { %2515 = vtanh.f32 %v392_v52 }
 0x4af   :  { %v2516_v59 = vpop.eup %2515 }
 0x4b0   :  { %395 = vrot.lane.b32.xlu0 %v2516_v59, %s2577_s3 }
 0x522   :  { %v396_v60 = vpop.permute.xlu0 %395 }
 0x523   :  { %v398_v61 = vmul.f32 %v396_v60, %v381_v47 }
 0x525   :  { %400 = vrot.lane.b32.xlu1 %v398_v61, %s2578_s25 }
 0x597   :  { %v401_v5 = vpop.permute.xlu1 %400 }
 0x598   :  { %404 = vst.msk [vmem:[#allocation3 + $0x8] sm:$0xff] %vm198_vm8, %v401_v5  ;;  %2227 = vmatmul.mubr.msk.f32.vlgmr.msra.gmra.mrb[8].mxu0 %vm198_vm8, %v401_v5 }
 0x599   :  { %2424 = vmatpush3.bf16.msra.mxu0 %v2648_v8  ;;  %2248 = vmatprep.mubr.msk.f32.mxu0 %vm2575_vm4, %v2576_v7 }
 0x59a   :  { %2425 = vmatprep.subr.bf16.mxu0 %v2573_v0 }
 0x59d   :  { %2427 = vmatpush3.bf16.msra.mxu0 %v2661_v12 }
 0x59e   :  { %2434 = vmatprep.subr.bf16.mxu0 %v2573_v0 }
 0x66b   :  { %v475_v9 = vpop.f32.mrb[8].mxu0 }
 0x66c   :  { %v479_v10 = vadd.f32 %v475_v9, %v157_v6  ;;  %v2228_v11 = vpop.f32.mrb[9].mxu0 }
 0x66e   :  { %v480_v13 = vmul.f32 0.5, %v479_v10 }
 0x670   :  { %v481_v15 = vsel %vm2685_vm7, %v479_v10, %v480_v13  ;;  %v172_v10 = vadd.f32 %v2740_v1, %v2682_v14 }
 0x671   :  { %2517 = vtanh.f32 %v481_v15 }
 0x67b   :  { %v2518_v16 = vpop.eup %2517 }
 0x67c   :  { %v483_v17 = vmul.f32 0.5, %v2518_v16 }
 0x67e   :  { %v484_v18 = vadd.f32 0.5, %v483_v17 }
 0x680   :  { %v485_v19 = vsel %vm2685_vm7, %v2518_v16, %v484_v18 }
 0x681   :  { %488 = vrot.lane.b32.xlu0 %v485_v19, %s2577_s3  ;;  %v486_v23 = vmul.f32 %v485_v19, %v392_v52 }
 0x6f3   :  { %v489_v20 = vpop.permute.xlu0 %488 }
 0x6f4   :  { %v491_v21 = vmul.f32 %v489_v20, %v485_v19 }
 0x6f6   :  { %493 = vrot.lane.b32.xlu1 %v491_v21, %s2578_s25 }
 0x768   :  { %v494_v24 = vpop.permute.xlu1 %493 }
 0x769   :  { %v496_v25 = vadd.f32 %v494_v24, %v486_v23 }
 0x76b   :  { %2519 = vtanh.f32 %v496_v25 }
 0x775   :  { %v2520_v26 = vpop.eup %2519 }
 0x776   :  { %499 = vrot.lane.b32.xlu0 %v2520_v26, %s2577_s3  ;;  %v1044_v26 = vld [vmem:[%s3091_s4 + $0x8] sm:$0xff] }
 0x7e8   :  { %v500_v27 = vpop.permute.xlu0 %499 }
 0x7e9   :  { %v502_v28 = vmul.f32 %v500_v27, %v485_v19 }
 0x7eb   :  { %504 = vrot.lane.b32.xlu1 %v502_v28, %s2578_s25 }
 0x85d   :  { %v505_v29 = vpop.permute.xlu1 %504 }
 0x85e   :  { %508 = vst.msk [vmem:[#allocation3 + $0x10] sm:$0xff] %vm198_vm8, %v505_v29  ;;  %2238 = vmatmul.mubr.msk.f32.vlgmr.msra.gmra.mrb[4].mxu1 %vm198_vm8, %v505_v29 }
 0x85f   :  { %2430 = vmatpush3.bf16.msra.mxu1 %v2648_v8  ;;  %2259 = vmatprep.mubr.msk.f32.mxu1 %vm2575_vm4, %v2576_v7 }
 0x860   :  { %2431 = vmatprep.subr.bf16.mxu1 %v2573_v0 }
 0x863   :  { %2433 = vmatpush3.bf16.msra.mxu1 %v2661_v12 }
 0x864   :  { %2440 = vmatprep.subr.bf16.mxu1 %v2573_v0 }
 0x931   :  { %v579_v31 = vpop.f32.mrb[4].mxu1 }
 0x932   :  { %v583_v32 = vadd.f32 %v579_v31, %v162_v30  ;;  %v2239_v33 = vpop.f32.mrb[5].mxu1  ;;  %v1045_v31 = vld [vmem:[%s3091_s4 + $0x10] sm:$0xff] }
 0x934   :  { %v584_v34 = vmul.f32 0.5, %v583_v32 }
 0x936   :  { %v585_v35 = vsel %vm2685_vm7, %v583_v32, %v584_v34  ;;  %v1046_v32 = vld [vmem:[%s3091_s4 + $0x18] sm:$0xff] }
 0x937   :  { %2521 = vtanh.f32 %v585_v35  ;;  %v2450_v33 = vpack.c.bf16 %v1046_v32, %v1045_v31  ;;  %v1035_v35 = vld [vmem:[#allocation3] sm:$0xff] }
 0x941   :  { %v2522_v36 = vpop.eup %2521 }
 0x942   :  { %v587_v37 = vmul.f32 0.5, %v2522_v36 }
 0x944   :  { %v588_v38 = vadd.f32 0.5, %v587_v37  ;;  %v1037_v37 = vld [vmem:[#allocation3 + $0x10] sm:$0xff] }
 0x946   :  { %v589_v39 = vsel %vm2685_vm7, %v2522_v36, %v588_v38  ;;  %v1036_v36 = vld [vmem:[#allocation3 + $0x8] sm:$0xff] }
 0x947   :  { %592 = vrot.lane.b32.xlu0 %v589_v39, %s2577_s3  ;;  %v590_v42 = vmul.f32 %v589_v39, %v496_v25  ;;  %v1043_v25 = vld [vmem:[%s3091_s4] sm:$0xff]  ;;  %s2579_s4 = smov 96  }
 0x948   :  { %v2446_v27 = vpack.c.bf16 %v1044_v26, %v1043_v25 }
 0x9b9   :  { %v593_v40 = vpop.permute.xlu0 %592 }
 0x9ba   :  { %v595_v41 = vmul.f32 %v593_v40, %v589_v39 }
 0x9bc   :  { %597 = vrot.lane.b32.xlu1 %v595_v41, %s2578_s25  ;;  %v177_v41 = vadd.f32 %v2682_v14, %v2746_v4 }
 0xa2e   :  { %v598_v43 = vpop.permute.xlu1 %597 }
 0xa2f   :  { %v600_v44 = vadd.f32 %v598_v43, %v590_v42 }
 0xa31   :  { %2523 = vtanh.f32 %v600_v44 }
 0xa3b   :  { %v2524_v45 = vpop.eup %2523 }
 0xa3c   :  { %603 = vrot.lane.b32.xlu0 %v2524_v45, %s2577_s3 }
 0xaae   :  { %v604_v46 = vpop.permute.xlu0 %603 }
 0xaaf   :  { %v606_v47 = vmul.f32 %v604_v46, %v589_v39 }
 0xab1   :  { %608 = vrot.lane.b32.xlu1 %v606_v47, %s2578_s25 }
 0xb23   :  { %v609_v48 = vpop.permute.xlu1 %608 }
 0xb24   :  { %612 = vst.msk [vmem:[#allocation3 + $0x18] sm:$0xff] %vm198_vm8, %v609_v48  ;;  %2249 = vmatmul.mubr.msk.f32.vlgmr.msra.gmra.mrb[10].mxu0 %vm198_vm8, %v609_v48 }
 0xb25   :  { %2436 = vmatpush3.bf16.msra.mxu0 %v2648_v8  ;;  %2270 = vmatprep.mubr.msk.f32.mxu0 %vm2575_vm4, %v2576_v7 }
 0xb26   :  { %2437 = vmatprep.subr.bf16.mxu0 %v2573_v0 }
 0xb29   :  { %2439 = vmatpush3.bf16.msra.mxu0 %v2661_v12 }
 0xb2a   :  { %2447 = vmatprep.subr.bf16.mxu0 %v2446_v27 }
 0xb2b   :  { %v1038_v38 = vld [vmem:[#allocation3 + $0x18] sm:$0xff] }
 0xbf7   :  { %v683_v50 = vpop.f32.mrb[10].mxu0 }
 0xbf8   :  { %v687_v51 = vadd.f32 %v683_v50, %v167_v49  ;;  %v2250_v52 = vpop.f32.mrb[11].mxu0 }
 0xbfa   :  { %v688_v53 = vmul.f32 0.5, %v687_v51 }
 0xbfc   :  { %v689_v54 = vsel %vm2685_vm7, %v687_v51, %v688_v53 }
 0xbfd   :  { %2525 = vtanh.f32 %v689_v54 }
 0xc07   :  { %v2526_v55 = vpop.eup %2525 }
 0xc08   :  { %v691_v56 = vmul.f32 0.5, %v2526_v55 }
 0xc0a   :  { %v692_v57 = vadd.f32 0.5, %v691_v56 }
 0xc0c   :  { %v693_v58 = vsel %vm2685_vm7, %v2526_v55, %v692_v57 }
 0xc0d   :  { %696 = vrot.lane.b32.xlu0 %v693_v58, %s2577_s3  ;;  %v694_v61 = vmul.f32 %v693_v58, %v600_v44 }
 0xc7f   :  { %v697_v59 = vpop.permute.xlu0 %696 }
 0xc80   :  { %v699_v60 = vmul.f32 %v697_v59, %v693_v58 }
 0xc82   :  { %701 = vrot.lane.b32.xlu1 %v699_v60, %s2578_s25 }
 0xcf4   :  { %v702_v62 = vpop.permute.xlu1 %701 }
 0xcf5   :  { %v704_v63 = vadd.f32 %v702_v62, %v694_v61  ;;  %v1191_v62 = vld [vmem:[%s3092_s5] sm:$0xff] }
 0xcf7   :  { %2527 = vtanh.f32 %v704_v63 }
 0xd01   :  { %v2528_v2 = vpop.eup %2527 }
 0xd02   :  { %707 = vrot.lane.b32.xlu0 %v2528_v2, %s2577_s3 }
 0xd74   :  { %v708_v5 = vpop.permute.xlu0 %707 }
 0xd75   :  { %v710_v6 = vmul.f32 %v708_v5, %v693_v58  ;;  %v1193_v5 = vld [vmem:[%s3092_s5 + $0x10] sm:$0xff] }
 0xd77   :  { %712 = vrot.lane.b32.xlu1 %v710_v6, %s2578_s25  ;;  %v1194_v6 = vld [vmem:[%s3092_s5 + $0x18] sm:$0xff] }
 0xde9   :  { %v713_v9 = vpop.permute.xlu1 %712 }
 0xdea   :  { %716 = vst.msk [vmem:[#allocation3 + $0x20] sm:$0xff] %vm198_vm8, %v713_v9  ;;  %2260 = vmatmul.mubr.msk.f32.vlgmr.msra.gmra.mrb[6].mxu1 %vm198_vm8, %v713_v9  ;;  %v2876_v9 = vpack.c.bf16 %v1194_v6, %v1193_v5 }
 0xdeb   :  { %2442 = vmatpush3.bf16.msra.mxu1 %v2648_v8  ;;  %2281 = vmatprep.mubr.msk.f32.mxu1 %vm2575_vm4, %v2576_v7 }
 0xdec   :  { %2443 = vmatprep.subr.bf16.mxu1 %v2573_v0 }
 0xdef   :  { %2445 = vmatpush3.bf16.msra.mxu1 %v2661_v12 }
 0xdf0   :  { %2454 = vmatprep.subr.bf16.mxu1 %v2573_v0 }
 0xdf1   :  { %v1039_v39 = vld [vmem:[#allocation3 + $0x20] sm:$0xff] }
 0xebd   :  { %v787_v11 = vpop.f32.mrb[6].mxu1 }
 0xebe   :  { %v791_v13 = vadd.f32 %v787_v11, %v172_v10  ;;  %v2261_v15 = vpop.f32.mrb[7].mxu1 }
 0xec0   :  { %v792_v16 = vmul.f32 0.5, %v791_v13 }
 0xec2   :  { %v793_v17 = vsel %vm2685_vm7, %v791_v13, %v792_v16  ;;  %v182_v16 = vadd.f32 %v2744_v3, %v2682_v14 }
 0xec3   :  { %2529 = vtanh.f32 %v793_v17 }
 0xecd   :  { %v2530_v8 = vpop.eup %2529 }
 0xece   :  { %v795_v18 = vmul.f32 0.5, %v2530_v8 }
 0xed0   :  { %v796_v19 = vadd.f32 0.5, %v795_v18 }
 0xed2   :  { %v797_v20 = vsel %vm2685_vm7, %v2530_v8, %v796_v19  ;;  %v2902_v19 = vld [vmem:[%s3093_s6] ss:$0 sm:$0xff] }
 0xed3   :  { %800 = vrot.lane.b32.xlu0 %v797_v20, %s2577_s3  ;;  %v798_v1 = vmul.f32 %v797_v20, %v704_v63  ;;  %v1192_v63 = vld [vmem:[%s3092_s5 + $0x8] sm:$0xff] }
 0xed4   :  { %v2866_v2 = vpack.c.bf16 %v1192_v63, %v1191_v62 }
 0xf45   :  { %v801_v12 = vpop.permute.xlu0 %800 }
 0xf46   :  { %v803_v21 = vmul.f32 %v801_v12, %v797_v20 }
 0xf48   :  { %805 = vrot.lane.b32.xlu1 %v803_v21, %s2578_s25 }
 0xfba   :  { %v806_v23 = vpop.permute.xlu1 %805 }
 0xfbb   :  { %v808_v24 = vadd.f32 %v806_v23, %v798_v1 }
 0xfbd   :  { %2531 = vtanh.f32 %v808_v24 }
 0xfc7   :  { %v2532_v28 = vpop.eup %2531 }
 0xfc8   :  { %811 = vrot.lane.b32.xlu0 %v2532_v28, %s2577_s3 }
0x103a   :  { %v812_v29 = vpop.permute.xlu0 %811 }
0x103b   :  { %v814_v30 = vmul.f32 %v812_v29, %v797_v20 }
0x103d   :  { %816 = vrot.lane.b32.xlu1 %v814_v30, %s2578_s25 }
0x10af   :  { %v817_v34 = vpop.permute.xlu1 %816 }
0x10b0   :  { %820 = vst.msk [vmem:[#allocation3 + $0x28] sm:$0xff] %vm198_vm8, %v817_v34  ;;  %2271 = vmatmul.mubr.msk.f32.vlgmr.msra.gmra.mrb[12].mxu0 %vm198_vm8, %v817_v34 }
0x10b1   :  { %2449 = vmatpush3.bf16.msra.mxu0 %v2446_v27  ;;  %2292 = vmatprep.mubr.msk.f32.mxu0 %vm198_vm8, %v1035_v35 }
0x10b2   :  { %2451 = vmatprep.subr.bf16.mxu0 %v2450_v33 }
0x10b5   :  { %2453 = vmatpush3.bf16.msra.mxu0 %v2450_v33 }
0x10b6   :  { %2466 = vmatprep.subr.bf16.mxu0 %v2573_v0 }
0x10b7   :  { %v1040_v40 = vld [vmem:[#allocation3 + $0x28] sm:$0xff] }
0x10b8   :  { %2293 = vmatmul.mubr.msk.f32.vlgmr.msra.gmra.mrb[14].mxu0 %vm198_vm8, %v1036_v36 }
0x10b9   :  { %2295 = vmatprep.mubr.msk.f32.mxu0 %vm198_vm8, %v1037_v37  ;;  %2468 = vmatpush3.bf16.msra.mxu0 %v2866_v2 }
0x10ba   :  { %2469 = vmatprep.subr.bf16.mxu0 %v2573_v0 }
0x10bc   :  { %2296 = vmatmul.mubr.msk.f32.gmra.mrb[16].mxu0 %vm198_vm8, %v1038_v38 }
0x10bd   :  { %2298 = vmatprep.mubr.msk.f32.mxu0 %vm198_vm8, %v1039_v39  ;;  %2471 = vmatpush3.bf16.msra.mxu0 %v2876_v9 }
0x10be   :  { %2478 = vmatprep.subr.bf16.mxu0 %v2573_v0 }
0x10c0   :  { %2299 = vmatmul.mubr.msk.f32.gmra.mrb[18].mxu0 %vm198_vm8, %v1040_v40 }
0x1183   :  { %v891_v42 = vpop.f32.mrb[12].mxu0 }
0x1184   :  { %v895_v43 = vadd.f32 %v891_v42, %v177_v41  ;;  %v2272_v44 = vpop.f32.mrb[13].mxu0 }
0x1186   :  { %v896_v45 = vmul.f32 0.5, %v895_v43 }
0x1188   :  { %v897_v46 = vsel %vm2685_vm7, %v895_v43, %v896_v45 }
0x1189   :  { %2533 = vtanh.f32 %v897_v46 }
0x118b   :  { %v2842_v47 = vpop.f32.mrb[14].mxu0 }
0x118c   :  { %v1144_v48 = vpop.f32.mrb[15].mxu0 }
0x118d   :  { %v1145_v20 = vadd.f32 %v2902_v19, %v1144_v48 }
0x118f   :  { %v2844_v49 = vpop.f32.mrb[16].mxu0 }
0x1190   :  { %v2846_v50 = vpop.f32.mrb[17].mxu0 }
0x1193   :  { %v2534_v51 = vpop.eup %2533  ;;  %v2848_v52 = vpop.f32.mrb[18].mxu0 }
0x1194   :  { %v2850_v53 = vpop.f32.mrb[19].mxu0  ;;  %v899_v4 = vmul.f32 0.5, %v2534_v51 }
0x1196   :  { %v900_v54 = vadd.f32 0.5, %v899_v4 }
0x1198   :  { %v901_v55 = vsel %vm2685_vm7, %v2534_v51, %v900_v54  ;;  %v1150_v54 = vadd.f32 %v2842_v47, %v2902_v19 }
0x1199   :  { %904 = vrot.lane.b32.xlu0 %v901_v55, %s2577_s3  ;;  %v902_v58 = vmul.f32 %v901_v55, %v808_v24 }
0x120b   :  { %v905_v56 = vpop.permute.xlu0 %904 }
0x120c   :  { %v907_v57 = vmul.f32 %v905_v56, %v901_v55 }
0x120e   :  { %909 = vrot.lane.b32.xlu1 %v907_v57, %s2578_s25 }
0x1280   :  { %v910_v59 = vpop.permute.xlu1 %909 }
0x1281   :  { %v2856_v60 = vadd.f32 %v910_v59, %v902_v58 }
0x1283   :  { %2535 = vtanh.f32 %v2856_v60 }
0x128d   :  { %v2536_v61 = vpop.eup %2535 }
0x128e   :  { %915 = vrot.lane.b32.xlu0 %v2536_v61, %s2577_s3 }
0x1300   :  { %v916_v10 = vpop.permute.xlu0 %915 }
0x1301   :  { %v918_v11 = vmul.f32 %v916_v10, %v901_v55 }
0x1303   :  { %920 = vrot.lane.b32.xlu1 %v918_v11, %s2578_s25 }
0x1375   :  { %v921_v13 = vpop.permute.xlu1 %920 }
0x1376   :  { %924 = vst.msk [vmem:[#allocation3 + $0x30] sm:$0xff] %vm198_vm8, %v921_v13  ;;  %2282 = vmatmul.mubr.msk.f32.vlgmr.msra.gmra.mrb[8].mxu1 %vm198_vm8, %v921_v13 }
0x1377   :  { %2456 = vmatpush3.bf16.msra.mxu1 %v2866_v2  ;;  %2312 = vmatprep.mubr.msk.f32.mxu1 %vm2575_vm4, %v2576_v7 }
0x1378   :  { %2457 = vmatprep.subr.bf16.mxu1 %v2573_v0 }
0x137b   :  { %2459 = vmatpush3.bf16.msra.mxu1 %v2876_v9 }
0x137c   :  { %2460 = vmatprep.subr.bf16.mxu1 %v2573_v0 }
0x137d   :  { %v1041_v15 = vld [vmem:[#allocation3 + $0x30] sm:$0xff] }
0x137e   :  { %2313 = vmatmul.mubr.f32.vlgmr.msra.gmra.mrb[10].mxu1 %v2576_v7  ;;  %2301 = vmatprep.mubr.msk.f32.mxu0 %vm198_vm8, %v1041_v15 }
0x137f   :  { %2462 = vmatpush3.bf16.msra.mxu1 %v2866_v2  ;;  %2323 = vmatprep.mubr.msk.f32.mxu1 %vm2575_vm4, %v2576_v7 }
0x1380   :  { %2463 = vmatprep.subr.bf16.mxu1 %v2573_v0 }
0x1383   :  { %2465 = vmatpush3.bf16.msra.mxu1 %v2876_v9 }
0x1384   :  { %2472 = vmatprep.subr.bf16.mxu1 %v2573_v0 }
0x1449   :  { %v995_v17 = vpop.f32.mrb[8].mxu1 }
0x144a   :  { %v999_v8 = vadd.f32 %v995_v17, %v182_v16  ;;  %v2283_v18 = vpop.f32.mrb[9].mxu1 }
0x144c   :  { %v1000_v29 = vmul.f32 0.5, %v999_v8 }
0x144e   :  { %v1001_v30 = vsel %vm2685_vm7, %v999_v8, %v1000_v29 }
0x1451   :  { %v1262_v12 = vpop.f32.mrb[10].mxu1 }
0x1452   :  { %v1266_v21 = vadd.f32 %v1262_v12, %v1145_v20  ;;  %v2314_v1 = vpop.f32.mrb[11].mxu1 }
0x1454   :  { %v1267_v23 = vmul.f32 0.5, %v1266_v21 }
0x1456   :  { %v1268_v24 = vsel %vm2685_vm7, %v1266_v21, %v1267_v23  ;;  %v1155_v21 = vadd.f32 %v2902_v19, %v2846_v50 }
0x1457   :  { %2537 = vtanh.f32 %v1268_v24 }
0x1458   :  { %2539 = vtanh.f32 %v1001_v30 }
0x1461   :  { %v2538_v25 = vpop.eup %2537 }
0x1462   :  { %v1270_v14 = vmul.f32 0.5, %v2538_v25  ;;  %v2540_v34 = vpop.eup %2539 }
0x1463   :  { %v1003_v35 = vmul.f32 0.5, %v2540_v34 }
0x1464   :  { %v1271_v3 = vadd.f32 0.5, %v1270_v14 }
0x1465   :  { %v1004_v37 = vadd.f32 0.5, %v1003_v35 }
0x1466   :  { %v1272_v26 = vsel %vm2685_vm7, %v2538_v25, %v1271_v3 }
0x1467   :  { %1275 = vrot.lane.b32.xlu0 %v1272_v26, %s2577_s3  ;;  %v1273_v31 = vmul.f32 0.0, %v1272_v26  ;;  %v1005_v38 = vsel %vm2685_vm7, %v2540_v34, %v1004_v37  ;;  %v1160_v37 = vadd.f32 %v2844_v49, %v2902_v19 }
0x1468   :  { %v1006_v44 = vmul.f32 %v1005_v38, %v2856_v60 }
0x14d9   :  { %v1276_v27 = vpop.permute.xlu0 %1275 }
0x14da   :  { %v1278_v28 = vmul.f32 %v1276_v27, %v1272_v26 }
0x14dc   :  { %1280 = vrot.lane.b32.xlu1 %v1278_v28, %s2578_s25 }
0x154e   :  { %v1281_v32 = vpop.permute.xlu1 %1280 }
0x154f   :  { %v1283_v33 = vadd.f32 %v1281_v32, %v1273_v31 }
0x1551   :  { %2541 = vtanh.f32 %v1283_v33 }
0x155b   :  { %v2542_v36 = vpop.eup %2541 }
0x155c   :  { %1286 = vrot.lane.b32.xlu0 %v2542_v36, %s2577_s3 }
0x1560   :  { %1008 = vrot.lane.b32.xlu0 %v1005_v38, %s2577_s3 }
0x15ce   :  { %v1287_v39 = vpop.permute.xlu0 %1286 }
0x15cf   :  { %v1289_v40 = vmul.f32 %v1287_v39, %v1272_v26 }
0x15d1   :  { %1291 = vrot.lane.b32.xlu1 %v1289_v40, %s2578_s25 }
0x15d2   :  { %v1009_v41 = vpop.permute.xlu0 %1008 }
0x15d3   :  { %v1011_v42 = vmul.f32 %v1009_v41, %v1005_v38 }
0x15d5   :  { %1013 = vrot.lane.b32.xlu0 %v1011_v42, %s2578_s25 }
0x1643   :  { %v1292_v43 = vpop.permute.xlu1 %1291 }
0x1644   :  { %1294 = vst.msk [vmem:[%s3094_s7] sm:$0xff] %vm198_vm8, %v1292_v43  ;;  %2324 = vmatmul.mubr.msk.f32.vlgmr.msra.gmra.mrb[12].mxu1 %vm198_vm8, %v1292_v43 }
0x1645   :  { %2474 = vmatpush3.bf16.msra.mxu1 %v2866_v2  ;;  %2345 = vmatprep.mubr.msk.f32.mxu1 %vm2575_vm4, %v2576_v7 }
0x1646   :  { %2475 = vmatprep.subr.bf16.mxu1 %v2573_v0 }
0x1647   :  { %v1014_v45 = vpop.permute.xlu0 %1013 }
0x1648   :  { %v2929_v46 = vadd.f32 %v1014_v45, %v1006_v44 }
0x1649   :  { %2477 = vmatpush3.bf16.msra.mxu1 %v2876_v9 }
0x164a   :  { %2543 = vtanh.f32 %v2929_v46  ;;  %2484 = vmatprep.subr.bf16.mxu1 %v2573_v0 }
0x1654   :  { %v2544_v48 = vpop.eup %2543 }
0x1655   :  { %1019 = vrot.lane.b32.xlu0 %v2544_v48, %s2577_s3 }
0x16c7   :  { %v1020_v51 = vpop.permute.xlu0 %1019 }
0x16c8   :  { %v1022_v4 = vmul.f32 %v1020_v51, %v1005_v38 }
0x16ca   :  { %1024 = vrot.lane.b32.xlu0 %v1022_v4, %s2578_s25 }
0x1717   :  { %v1364_v55 = vpop.f32.mrb[12].mxu1 }
0x1718   :  { %v1368_v56 = vadd.f32 %v1364_v55, %v1150_v54  ;;  %v2325_v57 = vpop.f32.mrb[13].mxu1 }
0x171a   :  { %v1369_v58 = vmul.f32 0.5, %v1368_v56 }
0x171c   :  { %v1370_v59 = vsel %vm2685_vm7, %v1368_v56, %v1369_v58 }
0x171d   :  { %2545 = vtanh.f32 %v1370_v59 }
0x1727   :  { %v2546_v60 = vpop.eup %2545 }
0x1728   :  { %v1372_v61 = vmul.f32 0.5, %v2546_v60 }
0x172a   :  { %v1373_v62 = vadd.f32 0.5, %v1372_v61 }
0x172c   :  { %v1374_v63 = vsel %vm2685_vm7, %v2546_v60, %v1373_v62  ;;  %v1165_v60 = vadd.f32 %v2902_v19, %v2850_v53 }
0x172d   :  { %1377 = vrot.lane.b32.xlu1 %v1374_v63, %s2577_s3  ;;  %v1375_v11 = vmul.f32 %v1374_v63, %v1283_v33 }
0x173c   :  { %v1025_v5 = vpop.permute.xlu0 %1024 }
0x173d   :  { %1028 = vst.msk [vmem:[#allocation3 + $0x38] sm:$0xff] %vm198_vm8, %v1025_v5  ;;  %1029 = vst.msk [vmem:[%s3095_s8] sm:$0xff] %vm198_vm8, %v1025_v5 }
0x1744   :  { %v1042_v47 = vld [vmem:[#allocation3 + $0x38] sm:$0xff] }
0x1745   :  { %2302 = vmatmul.mubr.msk.f32.gmra.mrb[20].mxu0 %vm198_vm8, %v1042_v47 }
0x1746   :  { %2334 = vmatprep.mubr.msk.f32.mxu0 %vm2575_vm4, %v2576_v7 }
0x179f   :  { %v1378_v6 = vpop.permute.xlu1 %1377 }
0x17a0   :  { %v1380_v10 = vmul.f32 %v1378_v6, %v1374_v63 }
0x17a2   :  { %1382 = vrot.lane.b32.xlu1 %v1380_v10, %s2578_s25 }
0x1814   :  { %v1383_v13 = vpop.permute.xlu1 %1382 }
0x1815   :  { %v1385_v15 = vadd.f32 %v1383_v13, %v1375_v11 }
0x1817   :  { %2547 = vtanh.f32 %v1385_v15 }
0x1818   :  { %v2952_v16 = vpop.f32.mrb[20].mxu0 }
0x1819   :  { %v2954_v17 = vpop.f32.mrb[21].mxu0 }
0x1821   :  { %v2548_v8 = vpop.eup %2547 }
0x1822   :  { %1388 = vrot.lane.b32.xlu1 %v2548_v8, %s2577_s3 }
0x1894   :  { %v1389_v18 = vpop.permute.xlu1 %1388 }
0x1895   :  { %v1391_v20 = vmul.f32 %v1389_v18, %v1374_v63 }
0x1897   :  { %1393 = vrot.lane.b32.xlu1 %v1391_v20, %s2578_s25 }
0x1909   :  { %v1394_v12 = vpop.permute.xlu1 %1393 }
0x190a   :  { %2063 = vst.msk [vmem:[%s3094_s7 + $0x8] sm:$0xff] %vm198_vm8, %v1394_v12  ;;  %2335 = vmatmul.mubr.msk.f32.vlgmr.msra.gmra.mrb[22].mxu0 %vm198_vm8, %v1394_v12 }
0x190b   :  { %2480 = vmatpush3.bf16.msra.mxu0 %v2866_v2  ;;  %2356 = vmatprep.mubr.msk.f32.mxu0 %vm2575_vm4, %v2576_v7 }
0x190c   :  { %2481 = vmatprep.subr.bf16.mxu0 %v2573_v0 }
0x190f   :  { %2483 = vmatpush3.bf16.msra.mxu0 %v2876_v9 }
0x1910   :  { %2490 = vmatprep.subr.bf16.mxu0 %v2573_v0 }
0x19dd   :  { %v1467_v1 = vpop.f32.mrb[22].mxu0 }
0x19de   :  { %v1471_v23 = vadd.f32 %v1467_v1, %v1155_v21  ;;  %v2336_v24 = vpop.f32.mrb[23].mxu0 }
0x19df   :  { %v1170_v24 = vadd.f32 %v2848_v52, %v2902_v19 }
0x19e0   :  { %v1472_v25 = vmul.f32 0.5, %v1471_v23 }
0x19e2   :  { %v1473_v14 = vsel %vm2685_vm7, %v1471_v23, %v1472_v25 }
0x19e3   :  { %2549 = vtanh.f32 %v1473_v14 }
0x19ed   :  { %v2550_v3 = vpop.eup %2549 }
0x19ee   :  { %v1475_v26 = vmul.f32 0.5, %v2550_v3 }
0x19f0   :  { %v1476_v27 = vadd.f32 0.5, %v1475_v26 }
0x19f2   :  { %v1477_v28 = vsel %vm2685_vm7, %v2550_v3, %v1476_v27 }
0x19f3   :  { %1480 = vrot.lane.b32.xlu0 %v1477_v28, %s2577_s3  ;;  %v1478_v50 = vmul.f32 %v1477_v28, %v1385_v15 }
0x1a65   :  { %v1481_v29 = vpop.permute.xlu0 %1480 }
0x1a66   :  { %v1483_v30 = vmul.f32 %v1481_v29, %v1477_v28 }
0x1a68   :  { %1485 = vrot.lane.b32.xlu1 %v1483_v30, %s2578_s25 }
0x1ada   :  { %v1486_v31 = vpop.permute.xlu1 %1485 }
0x1adb   :  { %v1488_v32 = vadd.f32 %v1486_v31, %v1478_v50 }
0x1add   :  { %2551 = vtanh.f32 %v1488_v32 }
0x1ae7   :  { %v2552_v33 = vpop.eup %2551 }
0x1ae8   :  { %1491 = vrot.lane.b32.xlu0 %v2552_v33, %s2577_s3 }
0x1b5a   :  { %v1492_v34 = vpop.permute.xlu0 %1491 }
0x1b5b   :  { %v1494_v35 = vmul.f32 %v1492_v34, %v1477_v28 }
0x1b5d   :  { %1496 = vrot.lane.b32.xlu1 %v1494_v35, %s2578_s25  ;;  %v1175_v35 = vadd.f32 %v2902_v19, %v2954_v17 }
0x1bcf   :  { %v1497_v36 = vpop.permute.xlu1 %1496 }
0x1bd0   :  { %2065 = vst.msk [vmem:[%s3094_s7 + $0x10] sm:$0xff] %vm198_vm8, %v1497_v36  ;;  %2346 = vmatmul.mubr.msk.f32.vlgmr.msra.gmra.mrb[14].mxu1 %vm198_vm8, %v1497_v36 }
0x1bd1   :  { %2486 = vmatpush3.bf16.msra.mxu1 %v2866_v2  ;;  %2367 = vmatprep.mubr.msk.f32.mxu1 %vm2575_vm4, %v2576_v7 }
0x1bd2   :  { %2487 = vmatprep.subr.bf16.mxu1 %v2573_v0 }
0x1bd5   :  { %2489 = vmatpush3.bf16.msra.mxu1 %v2876_v9 }
0x1bd6   :  { %2496 = vmatprep.subr.bf16.mxu1 %v2573_v0 }
0x1ca3   :  { %v1570_v38 = vpop.f32.mrb[14].mxu1 }
0x1ca4   :  { %v1574_v39 = vadd.f32 %v1570_v38, %v1160_v37  ;;  %v2347_v40 = vpop.f32.mrb[15].mxu1 }
0x1ca6   :  { %v1575_v41 = vmul.f32 0.5, %v1574_v39 }
0x1ca8   :  { %v1576_v42 = vsel %vm2685_vm7, %v1574_v39, %v1575_v41 }
0x1ca9   :  { %2553 = vtanh.f32 %v1576_v42 }
0x1cb3   :  { %v2554_v43 = vpop.eup %2553 }
0x1cb4   :  { %v1578_v44 = vmul.f32 0.5, %v2554_v43 }
0x1cb6   :  { %v1579_v45 = vadd.f32 0.5, %v1578_v44 }
0x1cb8   :  { %v1580_v48 = vsel %vm2685_vm7, %v2554_v43, %v1579_v45 }
0x1cb9   :  { %1583 = vrot.lane.b32.xlu0 %v1580_v48, %s2577_s3  ;;  %v1581_v49 = vmul.f32 %v1580_v48, %v1488_v32 }
0x1d2b   :  { %v1584_v51 = vpop.permute.xlu0 %1583 }
0x1d2c   :  { %v1586_v4 = vmul.f32 %v1584_v51, %v1580_v48 }
0x1d2e   :  { %1588 = vrot.lane.b32.xlu1 %v1586_v4, %s2578_s25 }
0x1da0   :  { %v1589_v54 = vpop.permute.xlu1 %1588 }
0x1da1   :  { %v1591_v55 = vadd.f32 %v1589_v54, %v1581_v49 }
0x1da3   :  { %2555 = vtanh.f32 %v1591_v55 }
0x1dad   :  { %v2556_v56 = vpop.eup %2555 }
0x1dae   :  { %1594 = vrot.lane.b32.xlu0 %v2556_v56, %s2577_s3 }
0x1e20   :  { %v1595_v57 = vpop.permute.xlu0 %1594 }
0x1e21   :  { %v1597_v58 = vmul.f32 %v1595_v57, %v1580_v48  ;;  %v1180_v57 = vadd.f32 %v2952_v16, %v2902_v19 }
0x1e23   :  { %1599 = vrot.lane.b32.xlu1 %v1597_v58, %s2578_s25 }
0x1e95   :  { %v1600_v59 = vpop.permute.xlu1 %1599 }
0x1e96   :  { %2067 = vst.msk [vmem:[%s3094_s7 + $0x18] sm:$0xff] %vm198_vm8, %v1600_v59  ;;  %2357 = vmatmul.mubr.msk.f32.vlgmr.msra.gmra.mrb[24].mxu0 %vm198_vm8, %v1600_v59 }
0x1e97   :  { %2492 = vmatpush3.bf16.msra.mxu0 %v2866_v2  ;;  %2378 = vmatprep.mubr.msk.f32.mxu0 %vm2575_vm4, %v2576_v7 }
0x1e98   :  { %2493 = vmatprep.subr.bf16.mxu0 %v2573_v0 }
0x1e9b   :  { %2495 = vmatpush3.bf16.msra.mxu0 %v2876_v9 }
0x1f69   :  { %v1673_v61 = vpop.f32.mrb[24].mxu0 }
0x1f6a   :  { %v1677_v62 = vadd.f32 %v1673_v61, %v1165_v60  ;;  %v2358_v63 = vpop.f32.mrb[25].mxu0 }
0x1f6c   :  { %v1678_v5 = vmul.f32 0.5, %v1677_v62 }
0x1f6e   :  { %v1679_v47 = vsel %vm2685_vm7, %v1677_v62, %v1678_v5 }
0x1f6f   :  { %2557 = vtanh.f32 %v1679_v47 }
0x1f79   :  { %v2558_v6 = vpop.eup %2557 }
0x1f7a   :  { %v1681_v10 = vmul.f32 0.5, %v2558_v6 }
0x1f7c   :  { %v1682_v11 = vadd.f32 0.5, %v1681_v10 }
0x1f7e   :  { %v1683_v13 = vsel %vm2685_vm7, %v2558_v6, %v1682_v11 }
0x1f7f   :  { %1686 = vrot.lane.b32.xlu0 %v1683_v13, %s2577_s3  ;;  %v1684_v53 = vmul.f32 %v1683_v13, %v1591_v55 }
0x1ff1   :  { %v1687_v15 = vpop.permute.xlu0 %1686 }
0x1ff2   :  { %v1689_v8 = vmul.f32 %v1687_v15, %v1683_v13 }
0x1ff4   :  { %1691 = vrot.lane.b32.xlu1 %v1689_v8, %s2578_s25 }
0x2066   :  { %v1692_v18 = vpop.permute.xlu1 %1691 }
0x2067   :  { %v1694_v20 = vadd.f32 %v1692_v18, %v1684_v53 }
0x2069   :  { %2559 = vtanh.f32 %v1694_v20 }
0x2073   :  { %v2560_v12 = vpop.eup %2559 }
0x2074   :  { %1697 = vrot.lane.b32.xlu0 %v2560_v12, %s2577_s3 }
0x20e6   :  { %v1698_v21 = vpop.permute.xlu0 %1697 }
0x20e7   :  { %v1700_v1 = vmul.f32 %v1698_v21, %v1683_v13 }
0x20e9   :  { %1702 = vrot.lane.b32.xlu1 %v1700_v1, %s2578_s25 }
0x215b   :  { %v1703_v23 = vpop.permute.xlu1 %1702 }
0x215c   :  { %2069 = vst.msk [vmem:[%s3094_s7 + $0x20] sm:$0xff] %vm198_vm8, %v1703_v23  ;;  %2368 = vmatmul.mubr.msk.f32.vlgmr.msra.gmra.mrb[16].mxu1 %vm198_vm8, %v1703_v23 }
0x215d   :  { %2498 = vmatpush3.bf16.msra.mxu1 %v2866_v2  ;;  %2389 = vmatprep.mubr.msk.f32.mxu1 %vm2575_vm4, %v2576_v7 }
0x215e   :  { %2499 = vmatprep.subr.bf16.mxu1 %v2573_v0 }
0x2161   :  { %2501 = vmatpush3.bf16.msra.mxu1 %v2876_v9 }
0x222f   :  { %v1776_v25 = vpop.f32.mrb[16].mxu1 }
0x2230   :  { %v1780_v14 = vadd.f32 %v1776_v25, %v1170_v24  ;;  %v2369_v3 = vpop.f32.mrb[17].mxu1 }
0x2232   :  { %v1781_v26 = vmul.f32 0.5, %v1780_v14 }
0x2234   :  { %v1782_v27 = vsel %vm2685_vm7, %v1780_v14, %v1781_v26 }
0x2235   :  { %2561 = vtanh.f32 %v1782_v27 }
0x223f   :  { %v2562_v28 = vpop.eup %2561 }
0x2240   :  { %v1784_v2 = vmul.f32 0.5, %v2562_v28 }
0x2242   :  { %v1785_v29 = vadd.f32 0.5, %v1784_v2 }
0x2244   :  { %v1786_v7 = vsel %vm2685_vm7, %v2562_v28, %v1785_v29 }
0x2245   :  { %1789 = vrot.lane.b32.xlu0 %v1786_v7, %s2577_s3  ;;  %v1787_v52 = vmul.f32 %v1786_v7, %v1694_v20 }
0x22b7   :  { %v1790_v0 = vpop.permute.xlu0 %1789 }
0x22b8   :  { %v1792_v9 = vmul.f32 %v1790_v0, %v1786_v7 }
0x22ba   :  { %1794 = vrot.lane.b32.xlu1 %v1792_v9, %s2578_s25 }
0x232c   :  { %v1795_v30 = vpop.permute.xlu1 %1794 }
0x232d   :  { %v1797_v50 = vadd.f32 %v1795_v30, %v1787_v52 }
0x232f   :  { %2563 = vtanh.f32 %v1797_v50 }
0x2339   :  { %v2564_v31 = vpop.eup %2563 }
0x233a   :  { %1800 = vrot.lane.b32.xlu0 %v2564_v31, %s2577_s3 }
0x23ac   :  { %v1801_v32 = vpop.permute.xlu0 %1800 }
0x23ad   :  { %v1803_v33 = vmul.f32 %v1801_v32, %v1786_v7 }
0x23af   :  { %1805 = vrot.lane.b32.xlu1 %v1803_v33, %s2578_s25 }
0x2421   :  { %v1806_v34 = vpop.permute.xlu1 %1805 }
0x2422   :  { %2071 = vst.msk [vmem:[%s3094_s7 + $0x28] sm:$0xff] %vm198_vm8, %v1806_v34  ;;  %2379 = vmatmul.mubr.msk.f32.vlgmr.msra.gmra.mrb[26].mxu0 %vm198_vm8, %v1806_v34 }
0x24f5   :  { %v1879_v36 = vpop.f32.mrb[26].mxu0 }
0x24f6   :  { %v1883_v37 = vadd.f32 %v1879_v36, %v1175_v35  ;;  %v2380_v38 = vpop.f32.mrb[27].mxu0 }
0x24f8   :  { %v1884_v39 = vmul.f32 0.5, %v1883_v37 }
0x24fa   :  { %v1885_v40 = vsel %vm2685_vm7, %v1883_v37, %v1884_v39 }
0x24fb   :  { %2565 = vtanh.f32 %v1885_v40 }
0x2505   :  { %v2566_v41 = vpop.eup %2565 }
0x2506   :  { %v1887_v42 = vmul.f32 0.5, %v2566_v41 }
0x2508   :  { %v1888_v43 = vadd.f32 0.5, %v1887_v42 }
0x250a   :  { %v1889_v44 = vsel %vm2685_vm7, %v2566_v41, %v1888_v43 }
0x250b   :  { %1892 = vrot.lane.b32.xlu0 %v1889_v44, %s2577_s3  ;;  %v1890_v17 = vmul.f32 %v1889_v44, %v1797_v50 }
0x257d   :  { %v1893_v45 = vpop.permute.xlu0 %1892 }
0x257e   :  { %v1895_v48 = vmul.f32 %v1893_v45, %v1889_v44 }
0x2580   :  { %1897 = vrot.lane.b32.xlu1 %v1895_v48, %s2578_s25 }
0x25f2   :  { %v1898_v51 = vpop.permute.xlu1 %1897 }
0x25f3   :  { %v1900_v4 = vadd.f32 %v1898_v51, %v1890_v17 }
0x25f5   :  { %2567 = vtanh.f32 %v1900_v4 }
0x25ff   :  { %v2568_v49 = vpop.eup %2567 }
0x2600   :  { %1903 = vrot.lane.b32.xlu0 %v2568_v49, %s2577_s3 }
0x2672   :  { %v1904_v54 = vpop.permute.xlu0 %1903 }
0x2673   :  { %v1906_v55 = vmul.f32 %v1904_v54, %v1889_v44 }
0x2675   :  { %1908 = vrot.lane.b32.xlu1 %v1906_v55, %s2578_s25 }
0x26e7   :  { %v1909_v56 = vpop.permute.xlu1 %1908 }
0x26e8   :  { %2073 = vst.msk [vmem:[%s3094_s7 + $0x30] sm:$0xff] %vm198_vm8, %v1909_v56  ;;  %2390 = vmatmul.mubr.msk.f32.vlgmr.msra.gmra.mrb[18].mxu1 %vm198_vm8, %v1909_v56 }
0x27bb   :  { %v1982_v58 = vpop.f32.mrb[18].mxu1 }
0x27bc   :  { %v1986_v59 = vadd.f32 %v1982_v58, %v1180_v57  ;;  %v2391_v60 = vpop.f32.mrb[19].mxu1 }
0x27be   :  { %v1987_v61 = vmul.f32 0.5, %v1986_v59 }
0x27c0   :  { %v1988_v62 = vsel %vm2685_vm7, %v1986_v59, %v1987_v61 }
0x27c1   :  { %2569 = vtanh.f32 %v1988_v62 }
0x27cb   :  { %v2570_v63 = vpop.eup %2569 }
0x27cc   :  { %v1990_v5 = vmul.f32 0.5, %v2570_v63 }
0x27ce   :  { %v1991_v47 = vadd.f32 0.5, %v1990_v5 }
0x27d0   :  { %v1992_v6 = vsel %vm2685_vm7, %v2570_v63, %v1991_v47 }
0x27d1   :  { %1995 = vrot.lane.b32.xlu0 %v1992_v6, %s2577_s3  ;;  %v1993_v19 = vmul.f32 %v1992_v6, %v1900_v4 }
0x2843   :  { %v1996_v10 = vpop.permute.xlu0 %1995 }
0x2844   :  { %v1998_v11 = vmul.f32 %v1996_v10, %v1992_v6 }
0x2846   :  { %2000 = vrot.lane.b32.xlu1 %v1998_v11, %s2578_s25 }
0x284a   :  { %1031 = vrot.lane.b32.xlu1 %v2929_v46, %s2579_s4 }
0x28b8   :  { %v2001_v16 = vpop.permute.xlu1 %2000 }
0x28b9   :  { %v2003_v13 = vadd.f32 %v2001_v16, %v1993_v19 }
0x28bb   :  { %2571 = vtanh.f32 %v2003_v13  ;;  %2019 = vrot.lane.b32.xlu1 %v2003_v13, %s2579_s4 }
0x28bc   :  { %v1032_v15 = vpop.permute.xlu1 %1031 }
0x28bd   :  { %1034 = vst.msk [vmem:[%s3096_s9] sm:$0xff] %vm198_vm8, %v1032_v15 }
0x28c5   :  { %v2572_v22 = vpop.eup %2571 }
0x28c6   :  { %2006 = vrot.lane.b32.xlu0 %v2572_v22, %s2577_s3 }
0x292d   :  { %v2020_v8 = vpop.permute.xlu1 %2019 }
0x292e   :  { %2077 = vst.msk [vmem:[%s3096_s9 + $0x8] sm:$0xff] %vm198_vm8, %v2020_v8 }
0x2938   :  { %v2007_v46 = vpop.permute.xlu0 %2006 }
0x2939   :  { %v2009_v53 = vmul.f32 %v2007_v46, %v1992_v6 }
0x293b   :  { %2011 = vrot.lane.b32.xlu0 %v2009_v53, %s2578_s25 }
0x29ad   :  { %v2012_v18 = vpop.permute.xlu0 %2011 }
0x29ae   :  { %2075 = vst.msk [vmem:[%s3094_s7 + $0x38] sm:$0xff] %vm198_vm8, %v2012_v18  ;;  %2076 = vst.msk [vmem:[%s3095_s8 + $0x8] sm:$0xff] %vm198_vm8, %v2012_v18 }

</bundles_post_ra>
